<compile_context>
chip_gen: v6e
topology: v6e:2x2x1
jax: 0.10.0
libtpu: 0.0.40
codegen_flags: <defaults>
</compile_context>

<pallas_src>
import jax
import jax.numpy as jnp
from jax import lax
from jax.experimental import pallas as pl
from jax.experimental.pallas import tpu as pltpu


def _bottleneck_kernel(x_ref, xtop_ref, xbot_ref,
                       w1_ref, s1_ref, b1_ref,
                       w2_ref, s2_ref, b2_ref,
                       w3_ref, s3_ref, b3_ref,
                       o_ref, h1_ref):
    _, HT, W, Cin = x_ref.shape
    width = w1_ref.shape[1]
    Cout = w3_ref.shape[1]
    bf16 = jnp.bfloat16

    hb = pl.program_id(1)
    nhb = pl.num_programs(1)

    # ---- conv1 (1x1) + bn1 + relu1 (bf16 matmul, f32 epilogue) -----------------
    def conv1(xrows_f32):                              # (R, Cin) -> (R, width) f32
        y = jnp.dot(xrows_f32.astype(bf16), w1_ref[...],
                    preferred_element_type=jnp.float32)
        return jnp.maximum(y * s1_ref[...] + b1_ref[...], 0.0)

    x_main = x_ref[...].reshape(HT * W, Cin)           # f32, also the residual
    h1_ref[pl.ds(1, HT)] = conv1(x_main).reshape(HT, W, width)

    # Halo rows were fetched from clamped row indices; zero them when they fall
    # outside the image (top of first H-block / bottom of last H-block).
    top_keep = jnp.where(hb > 0, 1.0, 0.0)
    bot_keep = jnp.where(hb < nhb - 1, 1.0, 0.0)
    h1_ref[0] = conv1(xtop_ref[...].reshape(W, Cin)) * top_keep
    h1_ref[HT + 1] = conv1(xbot_ref[...].reshape(W, Cin)) * bot_keep

    # ---- conv2 (3x3, stride 1, pad 1) as ONE im2col matmul + bn2 + relu2 -------
    r0 = h1_ref[pl.ds(0, HT)]                          # rows h-1
    r1 = h1_ref[pl.ds(1, HT)]                          # rows h
    r2 = h1_ref[pl.ds(2, HT)]                          # rows h+1
    band = jnp.concatenate([r0, r1, r2], axis=-1)      # (HT, W, 3*width)  [ky blocks]
    zcol = jnp.zeros((HT, 1, 3 * width), jnp.float32)
    band_l = jnp.concatenate([zcol, band[:, :W - 1, :]], axis=1)   # column w-1
    band_r = jnp.concatenate([band[:, 1:, :], zcol], axis=1)       # column w+1
    patch = jnp.concatenate([band_l, band, band_r], axis=-1)       # (HT, W, 9*width)
    h2 = jnp.dot(patch.reshape(HT * W, 9 * width).astype(bf16), w2_ref[...],
                 preferred_element_type=jnp.float32)
    h2 = jnp.maximum(h2 * s2_ref[...] + b2_ref[...], 0.0)          # (HT*W, width)

    # ---- conv3 (1x1) + bn3 + residual add + relu3 ------------------------------
    h3 = jnp.dot(h2.astype(bf16), w3_ref[...], preferred_element_type=jnp.float32)
    h3 = h3 * s3_ref[...] + b3_ref[...]
    out = jnp.maximum(h3 + x_main, 0.0)                # downsample=None -> identity=x
    o_ref[...] = out.reshape(1, HT, W, Cout)


def _fold_bn(gamma, beta, mean, var, eps=1e-5):
    scale = gamma / jnp.sqrt(var + eps)
    bias = beta - mean * scale
    return (scale.reshape(1, -1).astype(jnp.float32),
            bias.reshape(1, -1).astype(jnp.float32))


def _pick_h_tile(H, target=8):
    for t in range(min(H, target), 0, -1):
        if H % t == 0:
            return t
    return H


def quantizable_bottleneck(x_nchw, params, *, block_h=8):
    """x_nchw: (N, Cin, H, W) float32. Returns (N, Cout, H, W) with Cout == Cin."""
    N, Cin, H, W = x_nchw.shape
    w1, w2, w3 = params["w1"], params["w2"], params["w3"]
    width = w1.shape[1]
    Cout = w3.shape[1]
    assert Cin == Cout, "downsample=None requires inplanes == planes * expansion"
    assert w2.shape == (3, 3, width, width), "stride=1, groups=1, dilation=1 only"

    # TODO(synk): keep the surrounding model in NHWC to avoid this relayout round-trip.
    x = jnp.transpose(x_nchw, (0, 2, 3, 1)).astype(jnp.float32)   # NCHW -> NHWC

    s1, b1 = _fold_bn(*params["bn1"])
    s2, b2 = _fold_bn(*params["bn2"])
    s3, b3 = _fold_bn(*params["bn3"])

    # bf16 weights for the MXU; 3x3 weights reordered (kx, ky, ci, co) to match the
    # im2col patch channel layout [kx block][ky block][ci].
    w1b = w1.astype(jnp.bfloat16)
    w2col = jnp.transpose(w2, (1, 0, 2, 3)).reshape(9 * width, width).astype(jnp.bfloat16)
    w3b = w3.astype(jnp.bfloat16)

    ht = _pick_h_tile(H, block_h)
    nhb = H // ht

    const = lambda n, hb: (0, 0)
    in_specs = [
        # main activation tile
        pl.BlockSpec((1, ht, W, Cin), lambda n, hb: (n, hb, 0, 0)),
        # 1-row top/bottom halos of the SAME array (clamped; masked in-kernel)
        pl.BlockSpec((1, 1, W, Cin),
                     lambda n, hb: (n, jnp.maximum(hb * ht - 1, 0), 0, 0)),
        pl.BlockSpec((1, 1, W, Cin),
                     lambda n, hb: (n, jnp.minimum((hb + 1) * ht, H - 1), 0, 0)),
        # weights / folded BN params: constant index_map -> VMEM-resident
        pl.BlockSpec((Cin, width), const),
        pl.BlockSpec((1, width), const),
        pl.BlockSpec((1, width), const),
        pl.BlockSpec((9 * width, width), const),
        pl.BlockSpec((1, width), const),
        pl.BlockSpec((1, width), const),
        pl.BlockSpec((width, Cout), const),
        pl.BlockSpec((1, Cout), const),
        pl.BlockSpec((1, Cout), const),
    ]
    out_spec = pl.BlockSpec((1, ht, W, Cout), lambda n, hb: (n, hb, 0, 0))

    flops = 2 * N * H * W * (Cin * width + 9 * width * width + width * Cout)
    bytes_accessed = ((N * H * W * Cin + N * H * W * Cout) * 4
                      + (w1b.size + w2col.size + w3b.size) * 2)

    out_nhwc = pl.pallas_call(
        _bottleneck_kernel,
        out_shape=jax.ShapeDtypeStruct((N, H, W, Cout), jnp.float32),
        grid_spec=pltpu.PrefetchScalarGridSpec(
            num_scalar_prefetch=0,
            grid=(N, nhb),
            in_specs=in_specs,
            out_specs=out_spec,
            scratch_shapes=[pltpu.VMEM((ht + 2, W, width), jnp.float32)],
        ),
        compiler_params=pltpu.CompilerParams(
            dimension_semantics=("parallel", "parallel"),
            vmem_limit_bytes=48 * 1024 * 1024,
        ),
        cost_estimate=pl.CostEstimate(flops=flops, transcendentals=0,
                                      bytes_accessed=bytes_accessed),
    )(x, x, x, w1b, s1, b1, w2col, s2, b2, w3b, s3, b3)

    return jnp.transpose(out_nhwc, (0, 3, 1, 2))       # NHWC -> NCHW


# ---------------------------------------------------------------------------
# Pure-JAX reference with the SAME bf16 matmul inputs / f32 accumulation.
# ---------------------------------------------------------------------------
def _reference(x_nchw, params):
    x = jnp.transpose(x_nchw, (0, 2, 3, 1)).astype(jnp.float32)
    s1, b1 = _fold_bn(*params["bn1"])
    s2, b2 = _fold_bn(*params["bn2"])
    s3, b3 = _fold_bn(*params["bn3"])
    bf16 = jnp.bfloat16
    w1b = params["w1"].astype(bf16)
    w2b = params["w2"].astype(bf16)
    w3b = params["w3"].astype(bf16)

    h1 = jnp.einsum("nhwc,cd->nhwd", x.astype(bf16), w1b,
                    preferred_element_type=jnp.float32)
    h1 = jnp.maximum(h1 * s1 + b1, 0.0)
    h2 = lax.conv_general_dilated(
        h1.astype(bf16), w2b, window_strides=(1, 1), padding="SAME",
        dimension_numbers=("NHWC", "HWIO", "NHWC"),
        preferred_element_type=jnp.float32)
    h2 = jnp.maximum(h2 * s2 + b2, 0.0)
    h3 = jnp.einsum("nhwc,cd->nhwd", h2.astype(bf16), w3b,
                    preferred_element_type=jnp.float32)
    h3 = h3 * s3 + b3
    out = jnp.maximum(h3 + x, 0.0)
    return jnp.transpose(out, (0, 3, 1, 2))


def _make_params(key, inplanes, planes, base_width=64, groups=1):
    width = int(planes * (base_width / 64.0)) * groups      # = planes here
    cout = planes * 4                                        # expansion = 4
    ks = jax.random.split(key, 8)

    def bn(k, c):
        k1, k2, k3, k4 = jax.random.split(k, 4)
        gamma = 0.5 + jax.random.uniform(k1, (c,), jnp.float32)
        beta = 0.1 * jax.random.normal(k2, (c,), jnp.float32)
        mean = 0.1 * jax.random.normal(k3, (c,), jnp.float32)
        var = 0.5 + jax.random.uniform(k4, (c,), jnp.float32)
        return gamma, beta, mean, var

    return {
        "w1": 0.1 * jax.random.normal(ks[0], (inplanes, width), jnp.float32),
        "w2": 0.1 * jax.random.normal(ks[1], (3, 3, width, width), jnp.float32),
        "w3": 0.1 * jax.random.normal(ks[2], (width, cout), jnp.float32),
        "bn1": bn(ks[3], width),
        "bn2": bn(ks[4], width),
        "bn3": bn(ks[5], cout),
    }


if __name__ == "__main__":
    key = jax.random.PRNGKey(0)
    k_x, k_p = jax.random.split(key)

    # downsample=None requires inplanes == planes * expansion and stride == 1.
    N, planes, H, W = 2, 4, 16, 16
    inplanes = planes * 4                                    # 16
    x = jax.random.normal(k_x, (N, inplanes, H, W), jnp.float32)   # NCHW
    params = _make_params(k_p, inplanes, planes)

    out = jax.block_until_ready(quantizable_bottleneck(x, params, block_h=8))
    ref = jax.block_until_ready(_reference(x, params))

    assert out.shape == (N, inplanes, H, W)
    err = float(jnp.max(jnp.abs(out - ref)))
    assert jnp.allclose(out, ref, atol=2e-3, rtol=2e-3), f"max abs err {err}"
    print("KERNEL_OK")
</pallas_src>

<mosaic_0001>
module attributes {stable_mosaic.version = 11 : i64} {
  func.func @_bottleneck_kernel(%arg0: i32, %arg1: i32, %arg2: memref<1x8x16x16xf32, #tpu.memory_space<vmem>>, %arg3: memref<1x1x16x16xf32, #tpu.memory_space<vmem>>, %arg4: memref<1x1x16x16xf32, #tpu.memory_space<vmem>>, %arg5: memref<16x4xbf16, #tpu.memory_space<vmem>>, %arg6: memref<1x4xf32, #tpu.memory_space<vmem>>, %arg7: memref<1x4xf32, #tpu.memory_space<vmem>>, %arg8: memref<36x4xbf16, #tpu.memory_space<vmem>>, %arg9: memref<1x4xf32, #tpu.memory_space<vmem>>, %arg10: memref<1x4xf32, #tpu.memory_space<vmem>>, %arg11: memref<4x16xbf16, #tpu.memory_space<vmem>>, %arg12: memref<1x16xf32, #tpu.memory_space<vmem>>, %arg13: memref<1x16xf32, #tpu.memory_space<vmem>>, %arg14: memref<1x8x16x16xf32, #tpu.memory_space<vmem>>, %arg15: memref<10x16x4xf32, #tpu.memory_space<vmem>>) attributes {dimension_semantics = [#tpu.dimension_semantics<parallel>, #tpu.dimension_semantics<parallel>], iteration_bounds = array<i64: 2, 2>, scalar_prefetch = 0 : i64, scratch_operands = 1 : i64, tpu.core_type = #tpu.core_type<tc>, window_params = [{transform_indices = @transform_0, window_bounds = array<i64: 1, 8, 16, 16>}, {transform_indices = @transform_1, window_bounds = array<i64: 1, 1, 16, 16>}, {transform_indices = @transform_2, window_bounds = array<i64: 1, 1, 16, 16>}, {pipeline_mode = #tpu.pipeline_mode<synchronous>, transform_indices = @transform_3, window_bounds = array<i64: 16, 4>}, {pipeline_mode = #tpu.pipeline_mode<synchronous>, transform_indices = @transform_4, window_bounds = array<i64: 1, 4>}, {pipeline_mode = #tpu.pipeline_mode<synchronous>, transform_indices = @transform_5, window_bounds = array<i64: 1, 4>}, {pipeline_mode = #tpu.pipeline_mode<synchronous>, transform_indices = @transform_6, window_bounds = array<i64: 36, 4>}, {pipeline_mode = #tpu.pipeline_mode<synchronous>, transform_indices = @transform_7, window_bounds = array<i64: 1, 4>}, {pipeline_mode = #tpu.pipeline_mode<synchronous>, transform_indices = @transform_8, window_bounds = array<i64: 1, 4>}, {pipeline_mode = #tpu.pipeline_mode<synchronous>, transform_indices = @transform_9, window_bounds = array<i64: 4, 16>}, {pipeline_mode = #tpu.pipeline_mode<synchronous>, transform_indices = @transform_10, window_bounds = array<i64: 1, 16>}, {pipeline_mode = #tpu.pipeline_mode<synchronous>, transform_indices = @transform_11, window_bounds = array<i64: 1, 16>}, {transform_indices = @transform_12, window_bounds = array<i64: 1, 8, 16, 16>}]} {
    %c0 = arith.constant 0 : index
    %c0_0 = arith.constant 0 : index
    %c0_1 = arith.constant 0 : index
    %c0_2 = arith.constant 0 : index
    %0 = vector.load %arg2[%c0, %c0_0, %c0_1, %c0_2] : memref<1x8x16x16xf32, #tpu.memory_space<vmem>>, vector<1x8x16x16xf32>
    %1 = vector.shape_cast %0 : vector<1x8x16x16xf32> to vector<128x16xf32>
    %2 = arith.truncf %1 : vector<128x16xf32> to vector<128x16xbf16>
    %c0_3 = arith.constant 0 : index
    %c0_4 = arith.constant 0 : index
    %3 = vector.load %arg5[%c0_3, %c0_4] : memref<16x4xbf16, #tpu.memory_space<vmem>>, vector<16x4xbf16>
    %cst = arith.constant dense<0.000000e+00> : vector<128x4xf32>
    %4 = tpu.matmul %2, %3, %cst {dimension_numbers = #tpu.dot_dimension_numbers<[1], [0], [0], [1], [0, 0, 1, 1], [], []>} : vector<128x16xbf16>, vector<16x4xbf16>, vector<128x4xf32> -> vector<128x4xf32>
    %c0_5 = arith.constant 0 : index
    %c0_6 = arith.constant 0 : index
    %5 = vector.load %arg6[%c0_5, %c0_6] : memref<1x4xf32, #tpu.memory_space<vmem>>, vector<1x4xf32>
    %6 = vector.broadcast %5 : vector<1x4xf32> to vector<128x4xf32>
    %7 = arith.mulf %4, %6 : vector<128x4xf32>
    %c0_7 = arith.constant 0 : index
    %c0_8 = arith.constant 0 : index
    %8 = vector.load %arg7[%c0_7, %c0_8] : memref<1x4xf32, #tpu.memory_space<vmem>>, vector<1x4xf32>
    %9 = vector.broadcast %8 : vector<1x4xf32> to vector<128x4xf32>
    %10 = arith.addf %7, %9 : vector<128x4xf32>
    %cst_9 = arith.constant 0.000000e+00 : f32
    %11 = vector.broadcast %cst_9 : f32 to vector<128x4xf32>
    %12 = arith.maximumf %10, %11 : vector<128x4xf32>
    %13 = vector.shape_cast %12 : vector<128x4xf32> to vector<8x16x4xf32>
    %c1 = arith.constant 1 : index
    %c0_10 = arith.constant 0 : index
    %c0_11 = arith.constant 0 : index
    %14 = vector.load %arg15[%c1, %c0_10, %c0_11] : memref<10x16x4xf32, #tpu.memory_space<vmem>>, vector<8x16x4xf32>
    tpu.vector_store %arg15[%c1, %c0_10, %c0_11], %13 {strides = array<i32>} : memref<10x16x4xf32, #tpu.memory_space<vmem>>, vector<8x16x4xf32>,
    %c0_i32 = arith.constant 0 : i32
    %15 = arith.cmpi sgt, %arg1, %c0_i32 : i32
    %cst_12 = arith.constant 1.000000e+00 : f32
    %cst_13 = arith.constant 0.000000e+00 : f32
    %16 = arith.select %15, %cst_12, %cst_13 : f32
    %c1_i32 = arith.constant 1 : i32
    %17 = arith.cmpi slt, %arg1, %c1_i32 : i32
    %cst_14 = arith.constant 1.000000e+00 : f32
    %cst_15 = arith.constant 0.000000e+00 : f32
    %18 = arith.select %17, %cst_14, %cst_15 : f32
    %c0_16 = arith.constant 0 : index
    %c0_17 = arith.constant 0 : index
    %c0_18 = arith.constant 0 : index
    %c0_19 = arith.constant 0 : index
    %19 = vector.load %arg3[%c0_16, %c0_17, %c0_18, %c0_19] : memref<1x1x16x16xf32, #tpu.memory_space<vmem>>, vector<1x1x16x16xf32>
    %20 = vector.shape_cast %19 : vector<1x1x16x16xf32> to vector<16x16xf32>
    %21 = arith.truncf %20 : vector<16x16xf32> to vector<16x16xbf16>
    %c0_20 = arith.constant 0 : index
    %c0_21 = arith.constant 0 : index
    %22 = vector.load %arg5[%c0_20, %c0_21] : memref<16x4xbf16, #tpu.memory_space<vmem>>, vector<16x4xbf16>
    %cst_22 = arith.constant dense<0.000000e+00> : vector<16x4xf32>
    %23 = tpu.matmul %21, %22, %cst_22 {dimension_numbers = #tpu.dot_dimension_numbers<[1], [0], [0], [1], [0, 0, 1, 1], [], []>} : vector<16x16xbf16>, vector<16x4xbf16>, vector<16x4xf32> -> vector<16x4xf32>
    %c0_23 = arith.constant 0 : index
    %c0_24 = arith.constant 0 : index
    %24 = vector.load %arg6[%c0_23, %c0_24] : memref<1x4xf32, #tpu.memory_space<vmem>>, vector<1x4xf32>
    %25 = vector.broadcast %24 : vector<1x4xf32> to vector<16x4xf32>
    %26 = arith.mulf %23, %25 : vector<16x4xf32>
    %c0_25 = arith.constant 0 : index
    %c0_26 = arith.constant 0 : index
    %27 = vector.load %arg7[%c0_25, %c0_26] : memref<1x4xf32, #tpu.memory_space<vmem>>, vector<1x4xf32>
    %28 = vector.broadcast %27 : vector<1x4xf32> to vector<16x4xf32>
    %29 = arith.addf %26, %28 : vector<16x4xf32>
    %cst_27 = arith.constant 0.000000e+00 : f32
    %30 = vector.broadcast %cst_27 : f32 to vector<16x4xf32>
    %31 = arith.maximumf %29, %30 : vector<16x4xf32>
    %32 = vector.broadcast %16 : f32 to vector<16x4xf32>
    %33 = arith.mulf %31, %32 : vector<16x4xf32>
    %c0_28 = arith.constant 0 : index
    %c0_29 = arith.constant 0 : index
    %c0_30 = arith.constant 0 : index
    %34 = vector.load %arg15[%c0_28, %c0_29, %c0_30] : memref<10x16x4xf32, #tpu.memory_space<vmem>>, vector<1x16x4xf32>
    %35 = vector.shape_cast %34 : vector<1x16x4xf32> to vector<16x4xf32>
    %36 = vector.shape_cast %33 : vector<16x4xf32> to vector<1x16x4xf32>
    tpu.vector_store %arg15[%c0_28, %c0_29, %c0_30], %36 {strides = array<i32>} : memref<10x16x4xf32, #tpu.memory_space<vmem>>, vector<1x16x4xf32>,
    %c0_31 = arith.constant 0 : index
    %c0_32 = arith.constant 0 : index
    %c0_33 = arith.constant 0 : index
    %c0_34 = arith.constant 0 : index
    %37 = vector.load %arg4[%c0_31, %c0_32, %c0_33, %c0_34] : memref<1x1x16x16xf32, #tpu.memory_space<vmem>>, vector<1x1x16x16xf32>
    %38 = vector.shape_cast %37 : vector<1x1x16x16xf32> to vector<16x16xf32>
    %39 = arith.truncf %38 : vector<16x16xf32> to vector<16x16xbf16>
    %c0_35 = arith.constant 0 : index
    %c0_36 = arith.constant 0 : index
    %40 = vector.load %arg5[%c0_35, %c0_36] : memref<16x4xbf16, #tpu.memory_space<vmem>>, vector<16x4xbf16>
    %cst_37 = arith.constant dense<0.000000e+00> : vector<16x4xf32>
    %41 = tpu.matmul %39, %40, %cst_37 {dimension_numbers = #tpu.dot_dimension_numbers<[1], [0], [0], [1], [0, 0, 1, 1], [], []>} : vector<16x16xbf16>, vector<16x4xbf16>, vector<16x4xf32> -> vector<16x4xf32>
    %c0_38 = arith.constant 0 : index
    %c0_39 = arith.constant 0 : index
    %42 = vector.load %arg6[%c0_38, %c0_39] : memref<1x4xf32, #tpu.memory_space<vmem>>, vector<1x4xf32>
    %43 = vector.broadcast %42 : vector<1x4xf32> to vector<16x4xf32>
    %44 = arith.mulf %41, %43 : vector<16x4xf32>
    %c0_40 = arith.constant 0 : index
    %c0_41 = arith.constant 0 : index
    %45 = vector.load %arg7[%c0_40, %c0_41] : memref<1x4xf32, #tpu.memory_space<vmem>>, vector<1x4xf32>
    %46 = vector.broadcast %45 : vector<1x4xf32> to vector<16x4xf32>
    %47 = arith.addf %44, %46 : vector<16x4xf32>
    %cst_42 = arith.constant 0.000000e+00 : f32
    %48 = vector.broadcast %cst_42 : f32 to vector<16x4xf32>
    %49 = arith.maximumf %47, %48 : vector<16x4xf32>
    %50 = vector.broadcast %18 : f32 to vector<16x4xf32>
    %51 = arith.mulf %49, %50 : vector<16x4xf32>
    %c9 = arith.constant 9 : index
    %c0_43 = arith.constant 0 : index
    %c0_44 = arith.constant 0 : index
    %52 = vector.load %arg15[%c9, %c0_43, %c0_44] : memref<10x16x4xf32, #tpu.memory_space<vmem>>, vector<1x16x4xf32>
    %53 = vector.shape_cast %52 : vector<1x16x4xf32> to vector<16x4xf32>
    %54 = vector.shape_cast %51 : vector<16x4xf32> to vector<1x16x4xf32>
    tpu.vector_store %arg15[%c9, %c0_43, %c0_44], %54 {strides = array<i32>} : memref<10x16x4xf32, #tpu.memory_space<vmem>>, vector<1x16x4xf32>,
    %c0_45 = arith.constant 0 : index
    %c0_46 = arith.constant 0 : index
    %c0_47 = arith.constant 0 : index
    %55 = vector.load %arg15[%c0_45, %c0_46, %c0_47] : memref<10x16x4xf32, #tpu.memory_space<vmem>>, vector<8x16x4xf32>
    %c1_48 = arith.constant 1 : index
    %c0_49 = arith.constant 0 : index
    %c0_50 = arith.constant 0 : index
    %56 = vector.load %arg15[%c1_48, %c0_49, %c0_50] : memref<10x16x4xf32, #tpu.memory_space<vmem>>, vector<8x16x4xf32>
    %c2 = arith.constant 2 : index
    %c0_51 = arith.constant 0 : index
    %c0_52 = arith.constant 0 : index
    %57 = vector.load %arg15[%c2, %c0_51, %c0_52] : memref<10x16x4xf32, #tpu.memory_space<vmem>>, vector<8x16x4xf32>
    %58 = tpu.concatenate %55, %56, %57 in 2 : vector<8x16x4xf32>, vector<8x16x4xf32>, vector<8x16x4xf32> -> vector<8x16x12xf32>
    %cst_53 = arith.constant 0.000000e+00 : f32
    %59 = vector.broadcast %cst_53 : f32 to vector<8x1x12xf32>
    %60 = vector.extract_strided_slice %58 {offsets = [0, 0, 0], sizes = [8, 15, 12], strides = [1, 1, 1]} : vector<8x16x12xf32> to vector<8x15x12xf32>
    %61 = tpu.concatenate %59, %60 in 1 : vector<8x1x12xf32>, vector<8x15x12xf32> -> vector<8x16x12xf32>
    %62 = vector.extract_strided_slice %58 {offsets = [0, 1, 0], sizes = [8, 15, 12], strides = [1, 1, 1]} : vector<8x16x12xf32> to vector<8x15x12xf32>
    %63 = tpu.concatenate %62, %59 in 1 : vector<8x15x12xf32>, vector<8x1x12xf32> -> vector<8x16x12xf32>
    %64 = tpu.concatenate %61, %58, %63 in 2 : vector<8x16x12xf32>, vector<8x16x12xf32>, vector<8x16x12xf32> -> vector<8x16x36xf32>
    %65 = vector.shape_cast %64 : vector<8x16x36xf32> to vector<128x36xf32>
    %66 = arith.truncf %65 : vector<128x36xf32> to vector<128x36xbf16>
    %c0_54 = arith.constant 0 : index
    %c0_55 = arith.constant 0 : index
    %67 = vector.load %arg8[%c0_54, %c0_55] : memref<36x4xbf16, #tpu.memory_space<vmem>>, vector<36x4xbf16>
    %cst_56 = arith.constant dense<0.000000e+00> : vector<128x4xf32>
    %68 = tpu.matmul %66, %67, %cst_56 {dimension_numbers = #tpu.dot_dimension_numbers<[1], [0], [0], [1], [0, 0, 1, 1], [], []>} : vector<128x36xbf16>, vector<36x4xbf16>, vector<128x4xf32> -> vector<128x4xf32>
    %c0_57 = arith.constant 0 : index
    %c0_58 = arith.constant 0 : index
    %69 = vector.load %arg9[%c0_57, %c0_58] : memref<1x4xf32, #tpu.memory_space<vmem>>, vector<1x4xf32>
    %70 = vector.broadcast %69 : vector<1x4xf32> to vector<128x4xf32>
    %71 = arith.mulf %68, %70 : vector<128x4xf32>
    %c0_59 = arith.constant 0 : index
    %c0_60 = arith.constant 0 : index
    %72 = vector.load %arg10[%c0_59, %c0_60] : memref<1x4xf32, #tpu.memory_space<vmem>>, vector<1x4xf32>
    %73 = vector.broadcast %72 : vector<1x4xf32> to vector<128x4xf32>
    %74 = arith.addf %71, %73 : vector<128x4xf32>
    %cst_61 = arith.constant 0.000000e+00 : f32
    %75 = vector.broadcast %cst_61 : f32 to vector<128x4xf32>
    %76 = arith.maximumf %74, %75 : vector<128x4xf32>
    %77 = arith.truncf %76 : vector<128x4xf32> to vector<128x4xbf16>
    %c0_62 = arith.constant 0 : index
    %c0_63 = arith.constant 0 : index
    %78 = vector.load %arg11[%c0_62, %c0_63] : memref<4x16xbf16, #tpu.memory_space<vmem>>, vector<4x16xbf16>
    %cst_64 = arith.constant dense<0.000000e+00> : vector<128x16xf32>
    %79 = tpu.matmul %77, %78, %cst_64 {dimension_numbers = #tpu.dot_dimension_numbers<[1], [0], [0], [1], [0, 0, 1, 1], [], []>} : vector<128x4xbf16>, vector<4x16xbf16>, vector<128x16xf32> -> vector<128x16xf32>
    %c0_65 = arith.constant 0 : index
    %c0_66 = arith.constant 0 : index
    %80 = vector.load %arg12[%c0_65, %c0_66] : memref<1x16xf32, #tpu.memory_space<vmem>>, vector<1x16xf32>
    %81 = vector.broadcast %80 : vector<1x16xf32> to vector<128x16xf32>
    %82 = arith.mulf %79, %81 : vector<128x16xf32>
    %c0_67 = arith.constant 0 : index
    %c0_68 = arith.constant 0 : index
    %83 = vector.load %arg13[%c0_67, %c0_68] : memref<1x16xf32, #tpu.memory_space<vmem>>, vector<1x16xf32>
    %84 = vector.broadcast %83 : vector<1x16xf32> to vector<128x16xf32>
    %85 = arith.addf %82, %84 : vector<128x16xf32>
    %86 = arith.addf %85, %1 : vector<128x16xf32>
    %cst_69 = arith.constant 0.000000e+00 : f32
    %87 = vector.broadcast %cst_69 : f32 to vector<128x16xf32>
    %88 = arith.maximumf %86, %87 : vector<128x16xf32>
    %89 = vector.shape_cast %88 : vector<128x16xf32> to vector<1x8x16x16xf32>
    %c0_70 = arith.constant 0 : index
    %c0_71 = arith.constant 0 : index
    %c0_72 = arith.constant 0 : index
    %c0_73 = arith.constant 0 : index
    %90 = vector.load %arg14[%c0_70, %c0_71, %c0_72, %c0_73] : memref<1x8x16x16xf32, #tpu.memory_space<vmem>>, vector<1x8x16x16xf32>
    tpu.vector_store %arg14[%c0_70, %c0_71, %c0_72, %c0_73], %89 {strides = array<i32>} : memref<1x8x16x16xf32, #tpu.memory_space<vmem>>, vector<1x8x16x16xf32>,
    return
  }
  func.func @transform_0(%arg0: i32, %arg1: i32) -> (i32, i32, i32, i32) {
    %c0_i32 = arith.constant 0 : i32
    %c0_i32_0 = arith.constant 0 : i32
    %c0_i32_1 = arith.constant 0 : i32
    return %arg0, %arg1, %c0_i32, %c0_i32_0 : i32, i32, i32, i32
  }
  func.func @transform_1(%arg0: i32, %arg1: i32) -> (i32, i32, i32, i32) {
    %c8_i32 = arith.constant 8 : i32
    %0 = arith.muli %arg1, %c8_i32 : i32
    %c1_i32 = arith.constant 1 : i32
    %1 = arith.subi %0, %c1_i32 : i32
    %c0_i32 = arith.constant 0 : i32
    %2 = arith.maxsi %1, %c0_i32 : i32
    %c0_i32_0 = arith.constant 0 : i32
    %c0_i32_1 = arith.constant 0 : i32
    %c0_i32_2 = arith.constant 0 : i32
    return %arg0, %2, %c0_i32_0, %c0_i32_1 : i32, i32, i32, i32
  }
  func.func @transform_2(%arg0: i32, %arg1: i32) -> (i32, i32, i32, i32) {
    %c1_i32 = arith.constant 1 : i32
    %0 = arith.addi %arg1, %c1_i32 : i32
    %c8_i32 = arith.constant 8 : i32
    %1 = arith.muli %0, %c8_i32 : i32
    %c15_i32 = arith.constant 15 : i32
    %2 = arith.minsi %1, %c15_i32 : i32
    %c0_i32 = arith.constant 0 : i32
    %c0_i32_0 = arith.constant 0 : i32
    %c0_i32_1 = arith.constant 0 : i32
    return %arg0, %2, %c0_i32, %c0_i32_0 : i32, i32, i32, i32
  }
  func.func @transform_3(%arg0: i32, %arg1: i32) -> (i32, i32) {
    %c0_i32 = arith.constant 0 : i32
    %c0_i32_0 = arith.constant 0 : i32
    %c0_i32_1 = arith.constant 0 : i32
    return %c0_i32, %c0_i32_0 : i32, i32
  }
  func.func @transform_4(%arg0: i32, %arg1: i32) -> (i32, i32) {
    %c0_i32 = arith.constant 0 : i32
    %c0_i32_0 = arith.constant 0 : i32
    %c0_i32_1 = arith.constant 0 : i32
    return %c0_i32, %c0_i32_0 : i32, i32
  }
  func.func @transform_5(%arg0: i32, %arg1: i32) -> (i32, i32) {
    %c0_i32 = arith.constant 0 : i32
    %c0_i32_0 = arith.constant 0 : i32
    %c0_i32_1 = arith.constant 0 : i32
    return %c0_i32, %c0_i32_0 : i32, i32
  }
  func.func @transform_6(%arg0: i32, %arg1: i32) -> (i32, i32) {
    %c0_i32 = arith.constant 0 : i32
    %c0_i32_0 = arith.constant 0 : i32
    %c0_i32_1 = arith.constant 0 : i32
    return %c0_i32, %c0_i32_0 : i32, i32
  }
  func.func @transform_7(%arg0: i32, %arg1: i32) -> (i32, i32) {
    %c0_i32 = arith.constant 0 : i32
    %c0_i32_0 = arith.constant 0 : i32
    %c0_i32_1 = arith.constant 0 : i32
    return %c0_i32, %c0_i32_0 : i32, i32
  }
  func.func @transform_8(%arg0: i32, %arg1: i32) -> (i32, i32) {
    %c0_i32 = arith.constant 0 : i32
    %c0_i32_0 = arith.constant 0 : i32
    %c0_i32_1 = arith.constant 0 : i32
    return %c0_i32, %c0_i32_0 : i32, i32
  }
  func.func @transform_9(%arg0: i32, %arg1: i32) -> (i32, i32) {
    %c0_i32 = arith.constant 0 : i32
    %c0_i32_0 = arith.constant 0 : i32
    %c0_i32_1 = arith.constant 0 : i32
    return %c0_i32, %c0_i32_0 : i32, i32
  }
  func.func @transform_10(%arg0: i32, %arg1: i32) -> (i32, i32) {
    %c0_i32 = arith.constant 0 : i32
    %c0_i32_0 = arith.constant 0 : i32
    %c0_i32_1 = arith.constant 0 : i32
    return %c0_i32, %c0_i32_0 : i32, i32
  }
  func.func @transform_11(%arg0: i32, %arg1: i32) -> (i32, i32) {
    %c0_i32 = arith.constant 0 : i32
    %c0_i32_0 = arith.constant 0 : i32
    %c0_i32_1 = arith.constant 0 : i32
    return %c0_i32, %c0_i32_0 : i32, i32
  }
  func.func @transform_12(%arg0: i32, %arg1: i32) -> (i32, i32, i32, i32) {
    %c0_i32 = arith.constant 0 : i32
    %c0_i32_0 = arith.constant 0 : i32
    %c0_i32_1 = arith.constant 0 : i32
    return %arg0, %arg1, %c0_i32, %c0_i32_0 : i32, i32, i32, i32
  }
}

</mosaic_0001>

<bundles_post_ra>
// kernel: tpu_custom_call.1
= control target key start
LH: loop header
LB: loop body
LE: loop exit
PB: predicated region body
PF: predicated region fallthrough
CT: control target
= control target key end

     0   :  { %s3811_s0 = inlined_call_operand.hbm [shape: f32[2,16,16,16], index: 0, kind: input, shape index: {}]   ;;  %s3812_s1 = inlined_call_operand.hbm [shape: f32[2,16,16,16], index: 1, kind: input, shape index: {}]   ;;  %s3813_s2 = inlined_call_operand.hbm [shape: f32[2,16,16,16], index: 2, kind: input, shape index: {}]   ;;  %s3814_s3 = inlined_call_operand.vmem [shape: bf16[16,4], index: 3, kind: input, shape index: {}]   ;;  %s3815_s4 = inlined_call_operand.vmem [shape: f32[1,4], index: 4, kind: input, shape index: {}]   ;;  %s3816_s5 = inlined_call_operand.vmem [shape: f32[1,4], index: 5, kind: input, shape index: {}]   ;;  %s3817_s6 = inlined_call_operand.vmem [shape: bf16[36,4], index: 6, kind: input, shape index: {}]   ;;  %s3818_s7 = inlined_call_operand.vmem [shape: f32[1,4], index: 7, kind: input, shape index: {}]   ;;  %s3819_s8 = inlined_call_operand.vmem [shape: f32[1,4], index: 8, kind: input, shape index: {}]   ;;  %s3820_s9 = inlined_call_operand.vmem [shape: bf16[4,16], index: 9, kind: input, shape index: {}]   ;;  %s3821_s10 = inlined_call_operand.vmem [shape: f32[1,16], index: 10, kind: input, shape index: {}]   ;;  %s3822_s11 = inlined_call_operand.vmem [shape: f32[1,16], index: 11, kind: input, shape index: {}]   ;;  %s3823_s12 = inlined_call_operand.hbm [shape: f32[2,16,16,16], index: 12, kind: output, shape index: {}]  }
   0x1   :  { %3847 = sst [smem:[#allocation27_spill]] %s3811_s0 }
   0x2   :  { %3848 = sst [smem:[#allocation28_spill]] %s3812_s1 }
   0x3   :  { %3849 = sst [smem:[#allocation29_spill]] %s3813_s2 }
   0x4   :  { %3850 = sst [smem:[#allocation30_spill]] %s3814_s3 }
   0x5   :  { %3851 = sst [smem:[#allocation31_spill]] %s3815_s4 }
   0x6   :  { %3852 = sst [smem:[#allocation32_spill]] %s3816_s5 }
   0x7   :  { %3853 = sst [smem:[#allocation33_spill]] %s3817_s6 }
   0x8   :  { %3854 = sst [smem:[#allocation34_spill]] %s3818_s7 }
   0x9   :  { %3855 = sst [smem:[#allocation35_spill]] %s3819_s8 }
   0xa   :  { %3856 = sst [smem:[#allocation36_spill]] %s3820_s9 }
   0xb   :  { %3857 = sst [smem:[#allocation37_spill]] %s3821_s10 }
   0xc   :  { %3858 = sst [smem:[#allocation38_spill]] %s3822_s11 }
   0xd   :  { %3859 = sst [smem:[#allocation39_spill]] %s3823_s12 }
   0xe   :  { %17 = vsyncpa [#allocation4], 0 }
   0xf   :  { %19 = vsyncpa [#allocation4 + $0x1], 0 }
  0x10   :  { %20 = vsyncpa [#allocation7], 0 }
  0x11   :  { %22 = vsyncpa [#allocation7 + $0x1], 0 }
  0x12   :  { %23 = vsyncpa [#allocation5], 0 }
  0x13   :  { %25 = vsyncpa [#allocation5 + $0x1], 0  ;;  %s2859_s21 = smov 0   ;;  %s2861_s22 = smov 0  }
  0x14   :  { %s2863_s23 = smov 0   ;;  %s2865_s24 = smov 0  }
  0x15   :  { %s2867_s25 = smov 0   ;;  %s2869_s26 = smov 0  }
  0x16   :  { %s2871_s27 = smov 0   ;;  %s2873_s28 = smov 0  }
  0x17   :  { %s2875_s29 = smov 0   ;;  %s2877_s30 = smov 0  }
  0x18   :  { %s2879_s13 = smov 0   ;;  %s2881_s14 = smov 0  }
  0x19   :  { %s2883_s15 = smov 0   ;;  %s2885_s16 = smov 0  }
  0x1a LB: > { %3860 = sst [smem:[#allocation14_spill]] %s2743_s25  ;;  %s2930_s17 = sadd.s32 4294967295, %s2779_s16   ;;  %s2779_s16 = sphi %s2885_s16, %s31_s16   ;;  %s2775_s15 = sphi %s2883_s15, %s3924_s15   ;;  %s2771_s14 = sphi %s2881_s14, %s3923_s14   ;;  %s2767_s13 = sphi %s2879_s13, %s3922_s13   ;;  %s2763_s30 = sphi %s2877_s30, %s3921_s30   ;;  %s2759_s29 = sphi %s2875_s29, %s3920_s29   ;;  %s2755_s28 = sphi %s2873_s28, %s3929_s28   ;;  %s2751_s27 = sphi %s2871_s27, %s3928_s27   ;;  %s2747_s26 = sphi %s2869_s26, %s3918_s26   ;;  %s2743_s25 = sphi %s2867_s25, %s3917_s25   ;;  %s2739_s24 = sphi %s2865_s24, %s3916_s24   ;;  %s2735_s23 = sphi %s2863_s23, %s3927_s23   ;;  %s2731_s22 = sphi %s2861_s22, %s3926_s22   ;;  %s2727_s21 = sphi %s2859_s21, %s3925_s21  }
  0x1b   : > { %3861 = sst [smem:[#allocation15_spill]] %s2747_s26  ;;  %s40_s18 = sadd.s32 1, %s2771_s14 }
  0x1c   : > { %3862 = sst [smem:[#allocation16_spill]] %s2759_s29  ;;  %p41_p0 = scmp.ge.s32.totalorder %s40_s18, 2 }
  0x1d   : > { %3863 = sst [smem:[#allocation17_spill]] %s2763_s30  ;;  %s43_s19 = sadd.s32 1, %s2775_s15 }
  0x1e   : > { %3864 = sst [smem:[#allocation18_spill]] %s2767_s13  ;;  %p3843_p1 = scmp.eq.s32.totalorder %s2779_s16, 0 }
  0x1f   : > { %3865 = sst [smem:[#allocation19_spill]] %s2771_s14  ;;  %p3835_p2 = scmp.eq.s32.totalorder %s2930_s17, 0 }
  0x20   : > { %3866 = sst [smem:[#allocation20_spill]] %s2775_s15  ;;  %s3931_s18 = smov (%p41_p0, %s40_s18), 0 }
  0x21   : > { %3867 = sst [smem:[#allocation21_spill]] %s3931_s18  ;;  %s3933_s19 = smov (!%p41_p0, %s43_s19), %s2775_s15 }
  0x22   : > { %s48_s20 = ssub.s32 %s2771_s14, %s3931_s18  ;;  %s2025_s12 = sshll.u32 %s2771_s14, 3 }
  0x23   : > { %p45_p3 = scmp.ge.s32.totalorder %s3933_s19, 2  ;;  %s2026_s13 = sadd.s32 4294967295, %s2025_s12 }
  0x24   : > { %p77_p4 = scmp.gt.s32.totalorder %s2026_s13, 0  ;;  %s2027_s11 = sshll.u32 %s3931_s18, 3 }
  0x25   : > { %s3935_s19 = smov (%p45_p3, %s3933_s19), 0  ;;  %s2028_s8 = sadd.s32 4294967295, %s2027_s11 }
  0x26   : > { %3868 = sst [smem:[#allocation22_spill]] %s3935_s19  ;;  %s3937_s13 = smov (!%p77_p4, %s2026_s13), 0 }
  0x27   : > { %s2947_s10 = ssub.s32 %s2775_s15, %s3935_s19  ;;  %p81_p5 = scmp.gt.s32.totalorder %s2028_s8, 0 }
  0x28   : > { %3869 = sst [smem:[#allocation23_spill]] %s2947_s10  ;;  %s2950_s7 = sor.u32 %s48_s20, %s2947_s10 }
  0x29   : > { %p50_p6 = scmp.eq.s32.totalorder %s2950_s7, 0  ;;  %s88_s9 = sadd.s32 1, %s2747_s26 }
  0x2a   : > { %s3939_s8 = smov (!%p81_p5, %s2028_s8), 0  ;;  %p95_p7 = scmp.ne.s32.totalorder %s2747_s26, %s2743_s25 }
  0x2b   : > { %p101_p8 = scmp.ne.s32.totalorder %s2743_s25, %s2739_s24  ;;  %s84_s18 = ssub.s32 %s3937_s13, %s3939_s8 }
  0x2c   : > { %s2958_s19 = sadd.s32 8, %s2025_s12  ;;  %s85_s6 = sor.u32 %s84_s18, %s2947_s10 }
  0x2d   : > { %p2963_p9 = por %p95_p7, %p3843_p1  ;;  %p86_p10 = scmp.eq.s32.totalorder %s85_s6, 0 }
  0x2e   : > { %p2969_p11 = por %p101_p8, %p3835_p2  ;;  %s2974_s24 = sadd.s32 8, %s2027_s11 }
  0x2f   : > { %s2977_s8 = scalar_select %p86_p10, %s2747_s26, %s88_s9  }
  0x30   : > { %s3871_s5 = scalar_select %p2969_p11, 1, 0 }
  0x31   : > { %3873 = sst [smem:[#allocation25_spill]] %s2977_s8  ;;  %p3834_p0 = scmp.lt.s32.totalorder %s2779_s16, 4 }
  0x32   : > { %3872 = sst [smem:[#allocation24_spill]] %s3871_s5  ;;  %s2982_s12 = sshll.u32 %s2775_s15, 5 }
  0x33   : > { %s429_s6 = sand.u32 1, %s2779_s16   ;;  %s431_s18 = sand.u32 1, %s2747_s26  }
  0x34   : > { %s2038_s4 = sshll.u32 %s431_s18, 4  ;;  %s2041_s30 = sshll.u32 %s3937_s13, 1 }
  0x35   : > { %s443_s3 = sadd.s32 %s2041_s30, %s2982_s12  ;;  %s433_s5 = scalar_lea.vmem [#allocation6], %s2038_s4 }
  0x36   : > { %s446_s25 = sshll.u32 %s433_s5, 4  ;;  %s2043_s2 = sshll.u32 %s443_s3, 7  ;;  %s447_s25 = int_to_ptr.vmem [resolvable:$true] %s446_s25 }
  0x37   : > { %s3874_s1 = sld [smem:[#allocation28_spill]]  ;;  %p2994_p3 = pnand %p3834_p0, %p2963_p9 }
  0x38   : > { %p2049_p4 = scmp.ge.s32.totalorder %s2779_s16, 1  ;;  %p481_p5 = scmp.lt.s32.totalorder %s2779_s16, 5 }
  0x39   : > { %s3000_s18 = scalar_lea.sflag [#allocation7], %s429_s6  ;;  %p2545_p7 = pneg %p2994_p3 }
  0x3a   : > { %s2556_s4 = scalar_lea.vmem %s447_s25, 256  ;;  %s2781_s3 = smov [#allocation6]  }
  0x3b   : > { %p2557_p8 = scmp.ne.s32.totalorder %s447_s25, %s2556_s4  ;;  %s2561_s5 = sshll.u32 %s2781_s3, 4  ;;  %s2562_s5 = int_to_ptr.vmem [resolvable:$false] %s2561_s5 }
  0x3c   : > { %p2564_p12 = scmp.lt.s32.totalorder %s447_s25, %s2562_s5 }
  0x3d   : > { %s445_s9 = scalar_lea.hbm %s3874_s1, %s2043_s2  ;;  %p2559_p10 = pnand %p2557_p8, %p2545_p7 }
  0x3e   : > { %s2563_s2 = scalar_lea.vmem %s2562_s5, 512 }
  0x3f   : > { %p2560_p13 = pneg %p2559_p10  ;;  %p2565_p9 = scmp.lt.s32.totalorder %s2563_s2, %s2556_s4 }
  0x41   : > { %p2566_p0 = por %p2565_p9, %p2564_p12 }
  0x43   : > { %p2567_p2 = pnand %p2566_p0, %p2560_p13 }
  0x45   : > { %2570 = shalt.err (!%p2567_p2)
}
  0x46   : > { %s3836_s10 = smov 128   ;;  %s3838_s30 = smov 8  }
  0x47   : > { %2230 = dma.hbm_to_vmem [thread:$0]  (!%p2994_p3), %s445_s9, 256, %s447_s25, %s3000_s18, %s3836_s10, %s3836_s10, %s3838_s30  }
  0x48   : > { %p3014_p2 = pnand %p2049_p4, %p481_p5  ;;  %s2024_s20 = sadd.s32 4294967294, %s2779_s16  }
  0x49   : > { %s52_s6 = sadd.s32 1, %s2759_s29  ;;  %p59_p12 = scmp.ne.s32.totalorder %s2759_s29, %s2755_s28 }
  0x4a   : > { %s3023_s11 = scalar_select %p50_p6, %s2759_s29, %s52_s6  }
  0x4b   : > { %p65_p13 = scmp.ne.s32.totalorder %s2755_s28, %s2751_s27  ;;  %p352_p0 = scmp.eq.s32.totalorder %s2930_s17, 3 }
  0x4c   : > { %3877 = sst [smem:[#allocation26_spill]] %s3023_s11  ;;  %p358_p7 = scmp.eq.s32.totalorder %s2024_s20, 3 }
  0x4d   : > { %p3032_p8 = por %p3843_p1, %p59_p12  ;;  %p3879_p3 = scmp.eq.s32.totalorder %s2930_s17, 0 }
  0x4e   : > { %p3042_p5 = por %p352_p0, %p59_p12  ;;  %p3046_p6 = por %p358_p7, %p65_p13 }
  0x4f   : > { %p3038_p4 = por %p3879_p3, %p65_p13  ;;  %s405_s4 = sand.u32 1, %s2759_s29  }
  0x50   : > { %s3881_s7 = scalar_select %p3042_p5, 1, 0 }
  0x51   : > { %s3882_s9 = scalar_select %p3046_p6, 1, 0 }
  0x52   : > { %s2107_s3 = sshll.u32 %s2771_s14, 4  ;;  %s2033_s5 = sshll.u32 %s405_s4, 7 }
  0x53   : > { %s416_s2 = sadd.s32 %s2107_s3, %s2982_s12  ;;  %s409_s6 = scalar_lea.vmem [#allocation3], %s2033_s5 }
  0x54   : > { %s2037_s20 = sshll.u32 %s416_s2, 7  ;;  %s419_s10 = sshll.u32 %s409_s6, 4  ;;  %s420_s10 = int_to_ptr.vmem [resolvable:$true] %s419_s10 }
  0x55   : > { %s3883_s0 = sld [smem:[#allocation27_spill]]  ;;  %p3884_p10 = scmp.lt.s32.totalorder %s2779_s16, 4 }
  0x56   : > { %s406_s26 = scalar_lea.sflag [#allocation4], %s405_s4  ;;  %s2584_s14 = scalar_lea.vmem %s420_s10, 2048 }
  0x57   : > { %p3060_p9 = pnand %p3884_p10, %p3032_p8  ;;  %p2585_p13 = scmp.ne.s32.totalorder %s420_s10, %s2584_s14 }
  0x58   : > { %s2784_s3 = smov [#allocation3]  }
  0x59   : > { %p2573_p12 = pneg %p3060_p9  ;;  %s2589_s5 = sshll.u32 %s2784_s3, 4  ;;  %s2590_s5 = int_to_ptr.vmem [resolvable:$false] %s2589_s5 }
  0x5a   : > { %s2591_s1 = scalar_lea.vmem %s2590_s5, 4096  ;;  %p2592_p3 = scmp.lt.s32.totalorder %s420_s10, %s2590_s5 }
  0x5b   : > { %s418_s15 = scalar_lea.hbm %s3883_s0, %s2037_s20  ;;  %p2587_p0 = pnand %p2585_p13, %p2573_p12 }
  0x5c   : > { %p2593_p1 = scmp.lt.s32.totalorder %s2591_s1, %s2584_s14 }
  0x5d   : > { %p2588_p7 = pneg %p2587_p0 }
  0x5e   : > { %p2594_p6 = por %p2593_p1, %p2592_p3 }
  0x60   : > { %p2595_p5 = pnand %p2594_p6, %p2588_p7 }
  0x62   : > { %2598 = shalt.err (!%p2595_p5)
}
  0x63   : > { %s3886_s30 = smov 8   ;;  %s3887_s25 = smov 128  }
  0x64   : > { %s3888_s4 = sld [smem:[#allocation23_spill]]  ;;  %p3889_p1 = scmp.lt.s32.totalorder %s2958_s19, 15 }
  0x65   : > { %2227 = dma.hbm_to_vmem [thread:$0]  (!%p3060_p9), %s418_s15, 2048, %s420_s10, %s406_s26, %s3887_s25, %s3887_s25, %s3886_s30  }
  0x66   : > { %s3941_s19 = smov (!%p3889_p1, %s2958_s19), 15  ;;  %p3890_p8 = scmp.lt.s32.totalorder %s2974_s24, 15 }
  0x67   : > { %s124_s14 = sadd.s32 1, %s2735_s23  ;;  %p131_p5 = scmp.ne.s32.totalorder %s2735_s23, %s2731_s22 }
  0x68   : > { %s3943_s24 = smov (!%p3890_p8, %s2974_s24), 15  ;;  %p137_p6 = scmp.ne.s32.totalorder %s2731_s22, %s2727_s21 }
  0x69   : > { %s120_s11 = ssub.s32 %s3941_s19, %s3943_s24  ;;  %p3891_p10 = scmp.eq.s32.totalorder %s2779_s16, 0 }
  0x6a   : > { %s121_s2 = sor.u32 %s120_s11, %s3888_s4  ;;  %p3893_p0 = scmp.eq.s32.totalorder %s2930_s17, 0 }
  0x6b   : > { %p3085_p12 = por %p131_p5, %p3891_p10  ;;  %p122_p13 = scmp.eq.s32.totalorder %s121_s2, 0 }
  0x6c   : > { %p3091_p7 = por %p137_p6, %p3893_p0  ;;  %s458_s15 = sand.u32 1, %s2735_s23  }
  0x6d   : > { %s2046_s10 = sshll.u32 %s3941_s19, 1  ;;  %s2044_s24 = sshll.u32 %s458_s15, 4 }
  0x6e   : > { %s3894_s26 = scalar_select %p3091_p7, 1, 0 }
  0x6f   : > { %s3097_s6 = scalar_select %p122_p13, %s2735_s23, %s124_s14  }
  0x70   : > { %s470_s3 = sadd.s32 %s2046_s10, %s2982_s12  ;;  %s3895_s4 = sld [smem:[#allocation29_spill]] }
  0x71   : > { %s2048_s21 = sshll.u32 %s470_s3, 7  ;;  %s460_s0 = scalar_lea.vmem [#allocation8], %s2044_s24 }
  0x72   : > { %s473_s29 = sshll.u32 %s460_s0, 4  ;;  %p3896_p9 = scmp.lt.s32.totalorder %s2779_s16, 4  ;;  %s474_s29 = int_to_ptr.vmem [resolvable:$true] %s473_s29 }
  0x73   : > { %s2612_s19 = scalar_lea.vmem %s474_s29, 256  ;;  %s2785_s12 = smov [#allocation8]  }
  0x74   : > { %p3107_p3 = pnand %p3896_p9, %p3085_p12  ;;  %p2613_p8 = scmp.ne.s32.totalorder %s474_s29, %s2612_s19 }
  0x75   : > { %s2617_s14 = sshll.u32 %s2785_s12, 4  ;;  %s2618_s14 = int_to_ptr.vmem [resolvable:$false] %s2617_s14 }
  0x76   : > { %s472_s11 = scalar_lea.hbm %s3895_s4, %s2048_s21  ;;  %p2601_p1 = pneg %p3107_p3 }
  0x77   : > { %s2619_s15 = scalar_lea.vmem %s2618_s14, 512  ;;  %p2620_p10 = scmp.lt.s32.totalorder %s474_s29, %s2618_s14 }
  0x78   : > { %p2615_p5 = pnand %p2613_p8, %p2601_p1  ;;  %p2621_p13 = scmp.lt.s32.totalorder %s2619_s15, %s2612_s19 }
  0x7a   : > { %p2616_p6 = pneg %p2615_p5  ;;  %p2622_p0 = por %p2621_p13, %p2620_p10 }
  0x7c   : > { %p2623_p7 = pnand %p2622_p0, %p2616_p6 }
  0x7e   : > { %2626 = shalt.err (!%p2623_p7)
}
  0x7f   : > { %2233 = dma.hbm_to_vmem [thread:$0]  (!%p3107_p3), %s472_s11, 256, %s474_s29, %s3000_s18, %s3887_s25, %s3887_s25, %s3886_s30  }
  0x80   : > { %485 = sbr.rel (%p3014_p2) target bundleno = 1081 (0x439), region = 68  ;;  %s3122_s0 = sand.u32 (!%p3014_p2), 1, %s2755_s28  }
  0x81   : > { %s2050_s20 = sshll.u32 (!%p3014_p2), %s3122_s0, 7  ;;  %s488_s10 = scalar_lea.sflag (!%p3014_p2), [#allocation4], %s3122_s0 }
  0x82   : > { %s3128_s24 = scalar_lea.vmem (!%p3014_p2), [#allocation3], %s2050_s20 }
  0x85   : > { %2710 = dma.done.wait (%p3038_p4), %s488_s10, 2048  }
  0x86   : > { %2712 = vsyncadd (%p3038_p4), %s488_s10, 4294965248  ;;  %s3898_s29 = sld [smem:[#allocation14_spill]]  ;;  %s496_s13 = sand.u32 1, %s2930_s17  }
  0x87   : > { %s497_s3 = scalar_lea.sflag [#allocation7], %s496_s13 }
  0x8c   : > { %s498_s30 = sand.u32 1, %s3898_s29  }
  0x8d   : > { %s3136_s25 = sshll.u32 %s498_s30, 4 }
  0x8e   : > { %s500_s21 = scalar_lea.vmem [#allocation6], %s3136_s25 }
  0x8f   : > { %2714 = dma.done.wait (%p2969_p11), %s497_s3, 256  }
  0x90   : > { %2716 = vsyncadd (%p2969_p11), %s497_s3, 4294967040  ;;  %s507_s5 = sand.u32 1, %s2731_s22   ;;  %p3900_p2 = scmp.ne.s32.totalorder %s3894_s26, 0 }
  0x91   : > { %s3144_s8 = sshll.u32 %s507_s5, 4 }
  0x92   : > { %s509_s1 = scalar_lea.vmem [#allocation8], %s3144_s8 }
  0x93   : > { %2718 = dma.done.wait (%p3900_p2), %s497_s3, 256  }
  0x94   : > { %2720 = vsyncadd (%p3900_p2), %s497_s3, 4294967040  ;;  %v2786_v0 = vmov 0.0   ;;  %vm2787_vm0 = vmmov 0   ;;  %s3901_s11 = sld [smem:[#allocation30_spill]]  ;;  %v571_v2 = vld [vmem:[%s3128_s24] sm:$0xff]  ;;  %v572_v3 = vld [vmem:[%s3128_s24 + $0x8] sm:$0xff] }
  0x95   : > { %2162 = vmatprep.subr.bf16.mxu1 %v2786_v0  ;;  %2164 = vmatprep.mubr.msk.bf16.mxu1 %vm2787_vm0, %v2786_v0  ;;  %vm603_vm1 = vcmask 130048   ;;  %v573_v4 = vld [vmem:[%s3128_s24 + $0x10] sm:$0xff]  ;;  %v587_v5 = vpack.c.bf16 %v572_v3, %v571_v2  ;;  %v574_v6 = vld [vmem:[%s3128_s24 + $0x18] sm:$0xff]  ;;  %v575_v7 = vld [vmem:[%s3128_s24 + $0x20] sm:$0xff]  ;;  %s3902_s14 = sld [smem:[#allocation17_spill]]  ;;  %vm788_vm2 = vcmask 31744  }
  0x96   : > { %v576_v8 = vld [vmem:[%s3128_s24 + $0x28] sm:$0xff]  ;;  %v588_v9 = vpack.c.bf16 %v574_v6, %v573_v4  ;;  %v577_v12 = vld [vmem:[%s3128_s24 + $0x30] sm:$0xff]  ;;  %v578_v15 = vld [vmem:[%s3128_s24 + $0x38] sm:$0xff]  ;;  %s3903_s29 = sld [smem:[#allocation31_spill]]  ;;  %s2789_s5 = smov 4   ;;  %vm1163_vm3 = vcmask 64512  }
  0x97   : > { %v589_v10 = vpack.c.bf16 %v576_v8, %v575_v7  ;;  %2146 = vmatprep.mubr.msk.bf16.mxu0 %vm603_vm1, %v587_v5  ;;  %v809_v13 = vld [vmem:[%s500_s21] sm:$0xff]  ;;  %v810_v14 = vld [vmem:[%s500_s21 + $0x8] sm:$0xff]  ;;  %v590_v20 = vpack.c.bf16 %v578_v15, %v577_v12  ;;  %s3904_s30 = sld [smem:[#allocation32_spill]]  ;;  %s2788_s21 = smov 8   ;;  %vm1477_vm4 = vcmask 1041408   ;;  %vm1245_vm5 = vcmask 1046528  }
  0x98   : > { %v811_v16 = vpack.c.bf16 %v810_v14, %v809_v13  ;;  %v579_v17 = vld [vmem:[%s3128_s24 + $0x40] sm:$0xff]  ;;  %v580_v18 = vld [vmem:[%s3128_s24 + $0x48] sm:$0xff]  ;;  %v581_v25 = vld [vmem:[%s3128_s24 + $0x50] sm:$0xff]  ;;  %s3905_s17 = sld [smem:[#allocation33_spill]]  ;;  %vm1196_vm6 = vcmask 1040384   ;;  %s2790_s2 = smov 12  }
  0x99   : > { %v591_v21 = vpack.c.bf16 %v580_v18, %v579_v17  ;;  %v889_v22 = vld [vmem:[%s509_s1] sm:$0xff]  ;;  %v890_v23 = vld [vmem:[%s509_s1 + $0x8] sm:$0xff]  ;;  %s2791_s15 = smov 24   ;;  %s3906_s18 = sld [smem:[#allocation36_spill]]  ;;  %vm1390_vm7 = vcmask 97280   ;;  %vm1407_vm8 = vcmask 195584  }
  0x9a   : > { %v2521_v1 = vld [vmem:[%s3901_s11] sm:$0xff]   ;;  %v891_v24 = vpack.c.bf16 %v890_v23, %v889_v22  ;;  %v582_v26 = vld [vmem:[%s3128_s24 + $0x58] sm:$0xff]  ;;  %v584_v28 = vld [vmem:[%s3128_s24 + $0x68] sm:$0xff]  ;;  %vm1452_vm9 = vcmask 293888   ;;  %s3908_s8 = sld [smem:[#allocation35_spill]]  ;;  %p3913_p7 = scmp.ne.s32.totalorder %s3881_s7, 0 }
  0x9b   : > { %2144 = vmatprep.subr.bf16.mxu0 %v2521_v1  ;;  %v2522_v11 = vld [vmem:[%s3901_s11] sm:$0xff]   ;;  %v592_v29 = vpack.c.bf16 %v582_v26, %v581_v25  ;;  %v585_v31 = vld [vmem:[%s3128_s24 + $0x70] sm:$0xff]  ;;  %v586_v32 = vld [vmem:[%s3128_s24 + $0x78] sm:$0xff]  ;;  %p805_p11 = scmp.gt.s32.totalorder %s3902_s14, 0  ;;  %p807_p4 = scmp.lt.s32.totalorder %s3902_s14, 1 }
  0x9c   : > { %2145 = vmatpush3.bf16.msra.mxu0 %v2521_v1  ;;  %2163 = vmatpush3.bf16.msra.mxu1 %v2522_v11  ;;  %v2523_v19 = vld [vmem:[%s3901_s11] sm:$0xff]   ;;  %v594_v33 = vpack.c.bf16 %v586_v32, %v585_v31  ;;  %s3909_s26 = sld [smem:[#allocation37_spill]]  ;;  %s2110_s10 = sshll.u32 %s3902_s14, 4 }
  0x9d   : > { %2168 = vmatprep.subr.bf16.mxu1 %v2786_v0  ;;  %v583_v27 = vld [vmem:[%s3128_s24 + $0x60] sm:$0xff]  ;;  %s3206_s25 = scalar_select %p805_p11, 1.0, 0.0 }
  0x9e   : > { %v593_v30 = vpack.c.bf16 %v584_v28, %v583_v27  ;;  %v3195_v34 = vld [vmem:[%s3903_s29] ss:$0 sm:$0xff]  ;;  %s3227_s3 = scalar_select %p807_p4, 1.0, 0.0 }
  0x9f   : > { %2147 = vmatmul.mubr.msk.bf16.vlgmr.msra.gmra.mxu0 %vm603_vm1, %v588_v9  ;;  %2165 = vmatmul.mubr.msk.bf16.vlgmr.msra.gmra.mxu1 %vm603_vm1, %v811_v16  ;;  %v3200_v36 = vld [vmem:[%s3904_s30] ss:$0 sm:$0xff]  ;;  %v884_v54 = vstv %s3206_s25  ;;  %s3907_s25 = sld [smem:[#allocation34_spill]] }
  0xa0   : > { %2150 = vmatprep.mubr.msk.bf16.mxu0 %vm603_vm1, %v589_v10  ;;  %2169 = vmatpush3.bf16.msra.mxu1 %v2523_v19  ;;  %v964_v19 = vstv %s3227_s3  ;;  %s3910_s12 = sld [smem:[#allocation38_spill]] }
  0xa1   : > { %2170 = vmatprep.mubr.msk.bf16.mxu1 %vm2787_vm0, %v2786_v0  ;;  %s3912_s3 = sld [smem:[#allocation39_spill]] }
  0xa7   : > { %2151 = vmatmul.mubr.msk.bf16.gmra.mxu0 %vm603_vm1, %v590_v20  ;;  %2171 = vmatmul.mubr.msk.bf16.vlgmr.msra.gmra.mxu1 %vm603_vm1, %v891_v24 }
  0xa8   : > { %2154 = vmatprep.mubr.msk.bf16.mxu0 %vm603_vm1, %v591_v21 }
  0xaf   : > { %2155 = vmatmul.mubr.msk.bf16.gmra.mxu0 %vm603_vm1, %v592_v29 }
  0xb0   : > { %2158 = vmatprep.mubr.msk.bf16.mxu0 %vm603_vm1, %v593_v30 }
  0xb7   : > { %2159 = vmatmul.mubr.msk.bf16.gmra.mxu0 %vm603_vm1, %v594_v33 }
 0x15f   : > { %v2148_v35 = vpop.f32.mrf.mxu0  ;;  %v857_v42 = vpop.f32.mrf.mxu1 }
 0x160   : > { %v734_v37 = vmul.f32 %v2148_v35, %v3195_v34  ;;  %v871_v46 = vmul.f32 %v3195_v34, %v857_v42 }
 0x161   : > { %v662_v38 = vpop.f32.mrf.mxu0  ;;  %v2166_v48 = vpop.f32.mrf.mxu1 }
 0x162   : > { %v757_v39 = vadd.f32 %v3200_v36, %v734_v37  ;;  %v732_v40 = vmul.f32 %v3195_v34, %v662_v38  ;;  %v880_v52 = vadd.f32 %v3200_v36, %v871_v46 }
 0x163   : > { %v2149_v41 = vpop.f32.mrf.mxu0  ;;  %v860_v55 = vpop.f32.mrf.mxu1 }
 0x164   : > { %v773_v43 = vmax.f32 %v757_v39, 0.0  ;;  %v755_v44 = vadd.f32 %v3200_v36, %v732_v40  ;;  %v735_v45 = vmul.f32 %v2149_v41, %v3195_v34  ;;  %v882_v59 = vmax.f32 %v880_v52, 0.0 }
 0x165   : > { %v665_v47 = vpop.f32.mrf.mxu0  ;;  %v872_v61 = vmul.f32 %v3195_v34, %v860_v55  ;;  %v2167_v62 = vpop.f32.mrf.mxu1 }
 0x166   : > { %791 = vst.msk [vmem:[#allocation2 + $0x20] sm:$0xff] %vm788_vm2, %v773_v43  ;;  %v771_v49 = vmax.f32 %v755_v44, 0.0  ;;  %v758_v50 = vadd.f32 %v3200_v36, %v735_v45  ;;  %v733_v51 = vmul.f32 %v3195_v34, %v665_v47  ;;  %v885_v2 = vmul.f32 %v884_v54, %v882_v59 }
 0x167   : > { %v2152_v53 = vpop.f32.mrf.mxu0  ;;  %v881_v4 = vadd.f32 %v3200_v36, %v872_v61  ;;  %v937_v5 = vpop.f32.mrf.mxu1 }
 0x168   : > { %789 = vst.msk [vmem:[#allocation2 + $0x10] sm:$0xff] %vm788_vm2, %v771_v49  ;;  %v774_v56 = vmax.f32 %v758_v50, 0.0  ;;  %v756_v57 = vadd.f32 %v3200_v36, %v733_v51  ;;  %v738_v58 = vmul.f32 %v2152_v53, %v3195_v34  ;;  %887 = vst.msk [vmem:[#allocation2] sm:$0xff] %vm788_vm2, %v885_v2  ;;  %v951_v9 = vmul.f32 %v3195_v34, %v937_v5 }
 0x169   : > { %v678_v60 = vpop.f32.mrf.mxu0  ;;  %v883_v11 = vmax.f32 %v881_v4, 0.0  ;;  %v2172_v12 = vpop.f32.mrf.mxu1 }
 0x16a   : > { %792 = vst.msk [vmem:[#allocation2 + $0x28] sm:$0xff] %vm788_vm2, %v774_v56  ;;  %v772_v63 = vmax.f32 %v756_v57, 0.0  ;;  %v761_v0 = vadd.f32 %v3200_v36, %v738_v58  ;;  %v736_v1 = vmul.f32 %v3195_v34, %v678_v60  ;;  %v960_v16 = vadd.f32 %v3200_v36, %v951_v9 }
 0x16b   : > { %v2153_v3 = vpop.f32.mrf.mxu0  ;;  %v886_v18 = vmul.f32 %v884_v54, %v883_v11  ;;  %v940_v20 = vpop.f32.mrf.mxu1 }
 0x16c   : > { %790 = vst.msk [vmem:[#allocation2 + $0x18] sm:$0xff] %vm788_vm2, %v772_v63  ;;  %v777_v6 = vmax.f32 %v761_v0, 0.0  ;;  %v759_v7 = vadd.f32 %v3200_v36, %v736_v1  ;;  %v739_v8 = vmul.f32 %v2153_v3, %v3195_v34  ;;  %v962_v24 = vmax.f32 %v960_v16, 0.0 }
 0x16d   : > { %v681_v10 = vpop.f32.mrf.mxu0  ;;  %v3242_v26 = vld [vmem:[#allocation2 + $0x20] sm:$0xff]  ;;  %888 = vst.msk [vmem:[#allocation2 + $0x8] sm:$0xff] %vm788_vm2, %v886_v18  ;;  %v952_v28 = vmul.f32 %v3195_v34, %v940_v20  ;;  %v2173_v29 = vpop.f32.mrf.mxu1 }
 0x16e   : > { %795 = vst.msk [vmem:[#allocation2 + $0x40] sm:$0xff] %vm788_vm2, %v777_v6  ;;  %v775_v13 = vmax.f32 %v759_v7, 0.0  ;;  %v762_v14 = vadd.f32 %v3200_v36, %v739_v8  ;;  %v737_v15 = vmul.f32 %v3195_v34, %v681_v10  ;;  %v965_v39 = vmul.f32 %v964_v19, %v962_v24 }
 0x16f   : > { %v2156_v17 = vpop.f32.mrf.mxu0  ;;  %v3253_v37 = vld [vmem:[#allocation2 + $0x10] sm:$0xff]  ;;  %v961_v40 = vadd.f32 %v3200_v36, %v952_v28 }
 0x170   : > { %793 = vst.msk [vmem:[#allocation2 + $0x30] sm:$0xff] %vm788_vm2, %v775_v13  ;;  %v778_v21 = vmax.f32 %v762_v14, 0.0  ;;  %v760_v22 = vadd.f32 %v3200_v36, %v737_v15  ;;  %v742_v23 = vmul.f32 %v2156_v17, %v3195_v34  ;;  %968 = vst.msk [vmem:[#allocation2 + $0x90] sm:$0xff] %vm788_vm2, %v965_v39  ;;  %v2524_v39 = vld [vmem:[%s3905_s17 + $0x10] ss:$0 sps:$4 sm:$0x33]  }
 0x171   : > { %v694_v25 = vpop.f32.mrf.mxu0  ;;  %v3244_v27 = vld [vmem:[#allocation2 + $0x28] sm:$0xff]  ;;  %v963_v46 = vmax.f32 %v961_v40, 0.0  ;;  %2214 = vmatprep.subr.msk.bf16.mxu1 %vm1477_vm4, %v2524_v39 }
 0x172   : > { %796 = vst.msk [vmem:[#allocation2 + $0x48] sm:$0xff] %vm788_vm2, %v778_v21  ;;  %v776_v30 = vmax.f32 %v760_v22, 0.0  ;;  %v765_v31 = vadd.f32 %v3200_v36, %v742_v23  ;;  %v740_v32 = vmul.f32 %v3195_v34, %v694_v25  ;;  %v2371_v33 = vpack.i.bf16 %v3244_v27, %v3242_v26 }
 0x173   : > { %v2157_v35 = vpop.f32.mrf.mxu0  ;;  %v3255_v38 = vld [vmem:[#allocation2 + $0x18] sm:$0xff]  ;;  %v966_v51 = vmul.f32 %v964_v19, %v963_v46  ;;  %v1479_v46 = vsel %vm1477_vm4, %v2524_v39, 0 }
 0x174   : > { %794 = vst.msk [vmem:[#allocation2 + $0x38] sm:$0xff] %vm788_vm2, %v776_v30  ;;  %v781_v41 = vmax.f32 %v765_v31, 0.0  ;;  %v763_v42 = vadd.f32 %v3200_v36, %v740_v32  ;;  %v743_v43 = vmul.f32 %v2157_v35, %v3195_v34  ;;  %2372 = vrot.lane.b32.xlu1 %v2371_v33, %s2788_s21  ;;  %v2361_v44 = vpack.i.bf16 %v3255_v38, %v3253_v37  ;;  %v971_v35 = vld [vmem:[#allocation2 + $0x8] sm:$0xff] }
 0x175   : > { %v697_v45 = vpop.f32.mrf.mxu0  ;;  %969 = vst.msk [vmem:[#allocation2 + $0x98] sm:$0xff] %vm788_vm2, %v966_v51  ;;  %v3293_v7 = vld [vmem:[#allocation2 + $0x40] sm:$0xff]  ;;  %2175 = vmatpush3.bf16.msra.mxu1 %v1479_v46 }
 0x176   : > { %799 = vst.msk [vmem:[#allocation2 + $0x60] sm:$0xff] %vm788_vm2, %v781_v41  ;;  %v779_v47 = vmax.f32 %v763_v42, 0.0  ;;  %v766_v48 = vadd.f32 %v3200_v36, %v743_v43  ;;  %v741_v49 = vmul.f32 %v3195_v34, %v697_v45  ;;  %2362 = vrot.lane.b32.xlu0 %v2361_v44, %s2789_s5  ;;  %v2525_v42 = vld [vmem:[%s3905_s17 + $0x8] sm:$0xff]  }
 0x177   : > { %v2160_v50 = vpop.f32.mrf.mxu0  ;;  %v3277_v60 = vld [vmem:[#allocation2 + $0x30] sm:$0xff]  ;;  %2176 = vmatprep.subr.bf16.mxu1 %v2525_v42 }
 0x178   : > { %797 = vst.msk [vmem:[#allocation2 + $0x50] sm:$0xff] %vm788_vm2, %v779_v47  ;;  %v782_v52 = vmax.f32 %v766_v48, 0.0  ;;  %v764_v53 = vadd.f32 %v3200_v36, %v741_v49  ;;  %v746_v54 = vmul.f32 %v2160_v50, %v3195_v34  ;;  %v1017_v22 = vld [vmem:[#allocation2 + $0x90] sm:$0xff] }
 0x179   : > { %v710_v55 = vpop.f32.mrf.mxu0  ;;  %v3286_v3 = vld [vmem:[#allocation2 + $0x48] sm:$0xff]  ;;  %2177 = vmatpush3.bf16.msra.mxu1 %v2525_v42 }
 0x17a   : > { %800 = vst.msk [vmem:[#allocation2 + $0x68] sm:$0xff] %vm788_vm2, %v782_v52  ;;  %v780_v56 = vmax.f32 %v764_v53, 0.0  ;;  %v769_v57 = vadd.f32 %v3200_v36, %v746_v54  ;;  %v744_v58 = vmul.f32 %v3195_v34, %v710_v55  ;;  %2367 = vrot.lane.b32.xlu0 %v2371_v33, %s2789_s5  ;;  %v2381_v10 = vpack.i.bf16 %v3286_v3, %v3293_v7  ;;  %v970_v33 = vld [vmem:[#allocation2] sm:$0xff] }
 0x17b   : > { %v2161_v59 = vpop.f32.mrf.mxu0  ;;  %v3279_v61 = vld [vmem:[#allocation2 + $0x38] sm:$0xff] }
 0x17c   : > { %798 = vst.msk [vmem:[#allocation2 + $0x58] sm:$0xff] %vm788_vm2, %v780_v56  ;;  %v785_v62 = vmax.f32 %v769_v57, 0.0  ;;  %v767_v63 = vadd.f32 %v3200_v36, %v744_v58  ;;  %v747_v0 = vmul.f32 %v2161_v59, %v3195_v34  ;;  %v2376_v1 = vpack.i.bf16 %v3279_v61, %v3277_v60  ;;  %v1018_v23 = vld [vmem:[#allocation2 + $0x98] sm:$0xff] }
 0x17d   : > { %v713_v2 = vpop.f32.mrf.mxu0  ;;  %v3313_v14 = vld [vmem:[#allocation2 + $0x60] sm:$0xff]  ;;  %v2436_v24 = vpack.i.bf16 %v1018_v23, %v1017_v22 }
 0x17e   : > { %803 = vst.msk [vmem:[#allocation2 + $0x80] sm:$0xff] %vm788_vm2, %v785_v62  ;;  %v783_v4 = vmax.f32 %v767_v63, 0.0  ;;  %v770_v5 = vadd.f32 %v3200_v36, %v747_v0  ;;  %v745_v6 = vmul.f32 %v3195_v34, %v713_v2  ;;  %2377 = vrot.lane.b32.xlu1 %v2376_v1, %s2788_s21  ;;  %2387 = vrot.lane.b32.xlu0 %v2376_v1, %s2789_s5 }
 0x17f   : > { %v3302_v34 = vld [vmem:[#allocation2 + $0x50] sm:$0xff] }
 0x180   : > { %801 = vst.msk [vmem:[#allocation2 + $0x70] sm:$0xff] %vm788_vm2, %v783_v4  ;;  %v786_v8 = vmax.f32 %v770_v5, 0.0  ;;  %v768_v9 = vadd.f32 %v3200_v36, %v745_v6  ;;  %v2526_v5 = vld [vmem:[%s3905_s17] sm:$0xff]  }
 0x181   : > { %v3309_v36 = vld [vmem:[#allocation2 + $0x68] sm:$0xff]  ;;  %2178 = vmatprep.subr.bf16.mxu1 %v2526_v5 }
 0x182   : > { %804 = vst.msk [vmem:[#allocation2 + $0x88] sm:$0xff] %vm788_vm2, %v786_v8  ;;  %v784_v11 = vmax.f32 %v768_v9, 0.0  ;;  %2382 = vrot.lane.b32.xlu1 %v2381_v10, %s2789_s5  ;;  %2392 = vrot.lane.b32.xlu0 %v2381_v10, %s2788_s21  ;;  %v2401_v15 = vpack.i.bf16 %v3309_v36, %v3313_v14 }
 0x183   : > { %v3304_v12 = vld [vmem:[#allocation2 + $0x58] sm:$0xff]  ;;  %2179 = vmatpush3.bf16.msra.mxu1 %v2526_v5 }
 0x184   : > { %802 = vst.msk [vmem:[#allocation2 + $0x78] sm:$0xff] %vm788_vm2, %v784_v11  ;;  %v2396_v13 = vpack.i.bf16 %v3304_v12, %v3302_v34 }
 0x185   : > { %v1000_v20 = vld [vmem:[#allocation2 + $0x80] sm:$0xff] }
 0x186   : > { %2397 = vrot.lane.b32.xlu1 %v2396_v13, %s2788_s21  ;;  %2407 = vrot.lane.b32.xlu0 %v2396_v13, %s2789_s5 }
 0x187   : > { %v3319_v16 = vld [vmem:[#allocation2 + $0x70] sm:$0xff] }
 0x189   : > { %v1001_v19 = vld [vmem:[#allocation2 + $0x88] sm:$0xff] }
 0x18a   : > { %2402 = vrot.lane.b32.xlu1 %v2401_v15, %s2789_s5  ;;  %2412 = vrot.lane.b32.xlu0 %v2401_v15, %s2788_s21  ;;  %v2421_v21 = vpack.i.bf16 %v1001_v19, %v1000_v20 }
 0x18b   : > { %v3321_v17 = vld [vmem:[#allocation2 + $0x78] sm:$0xff] }
 0x18c   : > { %v2416_v18 = vpack.i.bf16 %v3321_v17, %v3319_v16 }
 0x18e   : > { %2417 = vrot.lane.b32.xlu1 %v2416_v18, %s2788_s21  ;;  %2427 = vrot.lane.b32.xlu0 %v2416_v18, %s2789_s5 }
 0x192   : > { %2422 = vrot.lane.b32.xlu1 %v2421_v21, %s2789_s5  ;;  %2432 = vrot.lane.b32.xlu0 %v2421_v21, %s2788_s21 }
 0x196   : > { %2437 = vrot.lane.b32.xlu1 %v2436_v24, %s2788_s21 }
 0x1e6   : > { %v2373_v25 = vpop.permute.xlu1 %2372 }
 0x1e7   : > { %v2375_v31 = vunpack.i.h.bf16 %v2373_v25  ;;  %v2374_v32 = vunpack.i.l.bf16 %v2373_v25 }
 0x1e8   : > { %v2363_v28 = vpop.permute.xlu0 %2362 }
 0x1e9   : > { %v2365_v29 = vunpack.i.h.bf16 %v2363_v28  ;;  %v2364_v30 = vunpack.i.l.bf16 %v2363_v28 }
 0x1eb   : > { %v1148_v40 = vsel %vm788_vm2, %v971_v35, %v2365_v29  ;;  %v1147_v41 = vsel %vm788_vm2, %v970_v33, %v2364_v30 }
 0x1ec   : > { %v2368_v43 = vpop.permute.xlu0 %2367  ;;  %v3339_v44 = vsel %vm1163_vm3, %v1147_v41, %v2374_v32  ;;  %v1165_v45 = vsel %vm1163_vm3, %v1148_v40, %v2375_v31 }
 0x1ed   : > { %v2369_v47 = vunpack.i.l.bf16 %v2368_v43  ;;  %v1198_v48 = vrot.slane %v1165_v45, 7  ;;  %v2441_v49 = vpack.i.bf16 %v1165_v45, %v3339_v44  ;;  %v2370_v50 = vunpack.i.h.bf16 %v2368_v43 }
 0x1ee   : > { %v1197_v51 = vrot.slane %v3339_v44, 7  ;;  %v1246_v52 = vrot.slane %v3339_v44, 1  ;;  %v1247_v53 = vrot.slane %v1165_v45, 1 }
 0x1ef   : > { %2442 = vrot.lane.b32.xlu0 %v2441_v49, %s2790_s2  ;;  %v1149_v59 = vsel %vm788_vm2, %v3253_v37, %v2369_v47  ;;  %v1150_v0 = vsel %vm788_vm2, %v3255_v38, %v2370_v50 }
 0x1f0   : > { %v2378_v54 = vpop.permute.xlu1 %2377  ;;  %v2388_v55 = vpop.permute.xlu0 %2387  ;;  %v1248_v56 = vsel %vm1245_vm5, %v1246_v52, %v1247_v53  ;;  %v1278_v57 = vsel %vm1245_vm5, %v1247_v53, 0.0  ;;  %v3353_v58 = vsel %vm1196_vm6, %v1197_v51, %v1198_v48 }
 0x1f1   : > { %v2380_v62 = vunpack.i.h.bf16 %v2378_v54  ;;  %v2379_v63 = vunpack.i.l.bf16 %v2378_v54  ;;  %v2390_v1 = vunpack.i.h.bf16 %v2388_v55  ;;  %v2389_v2 = vunpack.i.l.bf16 %v2388_v55 }
 0x1f2   : > { %v2446_v4 = vpack.i.bf16 %v1278_v57, %v1248_v56 }
 0x1f3   : > { %v3363_v6 = vsel %vm1163_vm3, %v1149_v59, %v2379_v63  ;;  %v1167_v8 = vsel %vm1163_vm3, %v1150_v0, %v2380_v62  ;;  %v1152_v21 = vsel %vm788_vm2, %v3244_v27, %v2390_v1  ;;  %v1151_v22 = vsel %vm788_vm2, %v3242_v26, %v2389_v2 }
 0x1f4   : > { %2447 = vrot.lane.b32.xlu0 %v2446_v4, %s2791_s15  ;;  %v2383_v37 = vpop.permute.xlu1 %2382  ;;  %v2393_v9 = vpop.permute.xlu0 %2392  ;;  %v1201_v10 = vrot.slane %v1167_v8, 7  ;;  %v2451_v38 = vpack.i.bf16 %v1167_v8, %v3363_v6  ;;  %v1200_v11 = vrot.slane %v3363_v6, 7  ;;  %v1249_v13 = vrot.slane %v3363_v6, 1 }
 0x1f5   : > { %v2385_v15 = vunpack.i.h.bf16 %v2383_v37  ;;  %v2384_v18 = vunpack.i.l.bf16 %v2383_v37  ;;  %v2395_v19 = vunpack.i.h.bf16 %v2393_v9  ;;  %v2394_v20 = vunpack.i.l.bf16 %v2393_v9 }
 0x1f6   : > { %2452 = vrot.lane.b32.xlu1 %v2451_v38, %s2790_s2  ;;  %v1250_v23 = vrot.slane %v1167_v8, 1  ;;  %v3378_v24 = vsel %vm1196_vm6, %v1200_v11, %v1201_v10 }
 0x1f7   : > { %v1153_v25 = vsel %vm788_vm2, %v3277_v60, %v2384_v18  ;;  %v1154_v28 = vsel %vm788_vm2, %v3279_v61, %v2385_v15  ;;  %v3385_v29 = vsel %vm1163_vm3, %v1151_v22, %v2394_v20  ;;  %v1169_v27 = vsel %vm1163_vm3, %v1152_v21, %v2395_v19 }
 0x1f8   : > { %v2398_v26 = vpop.permute.xlu1 %2397  ;;  %v2408_v30 = vpop.permute.xlu0 %2407  ;;  %v1251_v31 = vsel %vm1245_vm5, %v1249_v13, %v1250_v23  ;;  %v1279_v32 = vsel %vm1245_vm5, %v1250_v23, 0.0  ;;  %v1204_v33 = vrot.slane %v1169_v27, 7  ;;  %v2456_v35 = vpack.i.bf16 %v1169_v27, %v3385_v29 }
 0x1f9   : > { %v2400_v39 = vunpack.i.h.bf16 %v2398_v26  ;;  %v2399_v40 = vunpack.i.l.bf16 %v2398_v26  ;;  %v2410_v60 = vunpack.i.h.bf16 %v2408_v30  ;;  %v2409_v41 = vunpack.i.l.bf16 %v2408_v30 }
 0x1fa   : > { %v2461_v42 = vpack.i.bf16 %v1279_v32, %v1251_v31  ;;  %v1203_v61 = vrot.slane %v3385_v29, 7  ;;  %v1252_v43 = vrot.slane %v3385_v29, 1  ;;  %2457 = vrot.lane.b32.xlu0 %v2456_v35, %s2790_s2  ;;  %v1253_v45 = vrot.slane %v1169_v27, 1 }
 0x1fb   : > { %v3395_v46 = vsel %vm1163_vm3, %v1153_v25, %v2399_v40  ;;  %v1171_v47 = vsel %vm1163_vm3, %v1154_v28, %v2400_v39  ;;  %v1156_v48 = vsel %vm788_vm2, %v3286_v3, %v2410_v60  ;;  %v1155_v49 = vsel %vm788_vm2, %v3293_v7, %v2409_v41 }
 0x1fc   : > { %2462 = vrot.lane.b32.xlu1 %v2461_v42, %s2791_s15  ;;  %v2403_v50 = vpop.permute.xlu1 %2402  ;;  %v2413_v52 = vpop.permute.xlu0 %2412  ;;  %v2471_v53 = vpack.i.bf16 %v1171_v47, %v3395_v46  ;;  %v1255_v54 = vrot.slane %v3395_v46, 1  ;;  %v1254_v62 = vsel %vm1245_vm5, %v1252_v43, %v1253_v45  ;;  %v1280_v63 = vsel %vm1245_vm5, %v1253_v45, 0.0 }
 0x1fd   : > { %v2405_v55 = vunpack.i.h.bf16 %v2403_v50  ;;  %v2404_v56 = vunpack.i.l.bf16 %v2403_v50  ;;  %v2415_v57 = vunpack.i.h.bf16 %v2413_v52  ;;  %v2414_v59 = vunpack.i.l.bf16 %v2413_v52 }
 0x1fe   : > { %v1256_v3 = vrot.slane %v1171_v47, 1  ;;  %v3410_v7 = vsel %vm1196_vm6, %v1203_v61, %v1204_v33  ;;  %v1207_v0 = vrot.slane %v1171_v47, 7  ;;  %v1206_v1 = vrot.slane %v3395_v46, 7 }
 0x1ff   : > { %v2466_v2 = vpack.i.bf16 %v1280_v63, %v1254_v62  ;;  %v3414_v4 = vsel %vm1163_vm3, %v1155_v49, %v2414_v59  ;;  %v1157_v5 = vsel %vm788_vm2, %v3302_v34, %v2404_v56  ;;  %v3422_v38 = vsel %vm1163_vm3, %v1156_v48, %v2415_v57 }
 0x200   : > { %2472 = vrot.lane.b32.xlu1 %v2471_v53, %s2790_s2  ;;  %v2418_v8 = vpop.permute.xlu1 %2417  ;;  %v2428_v37 = vpop.permute.xlu0 %2427  ;;  %v1257_v9 = vsel %vm1245_vm5, %v1255_v54, %v1256_v3  ;;  %v1281_v10 = vsel %vm1245_vm5, %v1256_v3, 0.0  ;;  %v1158_v34 = vsel %vm788_vm2, %v3304_v12, %v2405_v55  ;;  %v2476_v21 = vpack.i.bf16 %v3422_v38, %v3414_v4 }
 0x201   : > { %2467 = vrot.lane.b32.xlu0 %v2466_v2, %s2791_s15  ;;  %v2420_v13 = vunpack.i.h.bf16 %v2418_v8  ;;  %v2419_v15 = vunpack.i.l.bf16 %v2418_v8  ;;  %v2430_v18 = vunpack.i.h.bf16 %v2428_v37  ;;  %v2429_v19 = vunpack.i.l.bf16 %v2428_v37 }
 0x202   : > { %v2481_v20 = vpack.i.bf16 %v1281_v10, %v1257_v9  ;;  %v1209_v22 = vrot.slane %v3414_v4, 7  ;;  %v1210_v23 = vrot.slane %v3422_v38, 7  ;;  %v1258_v25 = vrot.slane %v3414_v4, 1 }
 0x203   : > { %v3433_v28 = vsel %vm1163_vm3, %v1157_v5, %v2419_v15  ;;  %v1175_v27 = vsel %vm1163_vm3, %v1158_v34, %v2420_v13  ;;  %v1160_v26 = vsel %vm788_vm2, %v3309_v36, %v2430_v18  ;;  %v1159_v12 = vsel %vm788_vm2, %v3313_v14, %v2429_v19 }
 0x204   : > { %2482 = vrot.lane.b32.xlu1 %v2481_v20, %s2791_s15  ;;  %v2423_v30 = vpop.permute.xlu1 %2422  ;;  %v2433_v31 = vpop.permute.xlu0 %2432  ;;  %v2491_v32 = vpack.i.bf16 %v1175_v27, %v3433_v28  ;;  %v1261_v33 = vrot.slane %v3433_v28, 1  ;;  %v1213_v60 = vrot.slane %v1175_v27, 7  ;;  %v1259_v36 = vrot.slane %v3422_v38, 1  ;;  %v1648_v38 = vld [vmem:[%s3906_s18] sm:$0x3] }
 0x205   : > { %2477 = vrot.lane.b32.xlu0 %v2476_v21, %s2790_s2  ;;  %v2424_v35 = vunpack.i.l.bf16 %v2423_v30  ;;  %v2435_v39 = vunpack.i.h.bf16 %v2433_v31  ;;  %v2434_v40 = vunpack.i.l.bf16 %v2433_v31  ;;  %v2425_v41 = vunpack.i.h.bf16 %v2423_v30  ;;  %2215 = vmatprep.subr.msk.bf16.mxu0 %vm1477_vm4, %v1648_v38 }
 0x206   : > { %v1262_v42 = vrot.slane %v1175_v27, 1  ;;  %v3448_v14 = vsel %vm1196_vm6, %v1206_v1, %v1207_v0  ;;  %v1212_v45 = vrot.slane %v3433_v28, 7  ;;  %v1260_v49 = vsel %vm1245_vm5, %v1258_v25, %v1259_v36 }
 0x207   : > { %v1161_v43 = vsel %vm788_vm2, %v3319_v16, %v2424_v35  ;;  %v3454_v47 = vsel %vm1163_vm3, %v1159_v12, %v2434_v40  ;;  %v1177_v48 = vsel %vm1163_vm3, %v1160_v26, %v2435_v39  ;;  %v1282_v50 = vsel %vm1245_vm5, %v1259_v36, 0.0 }
 0x208   : > { %2492 = vrot.lane.b32.xlu1 %v2491_v32, %s2790_s2  ;;  %v2438_v52 = vpop.permute.xlu1 %2437  ;;  %v1263_v53 = vsel %vm1245_vm5, %v1261_v33, %v1262_v42  ;;  %v1283_v54 = vsel %vm1245_vm5, %v1262_v42, 0.0  ;;  %v2486_v55 = vpack.i.bf16 %v1282_v50, %v1260_v49  ;;  %v1162_v59 = vsel %vm788_vm2, %v3321_v17, %v2425_v41 }
 0x209   : > { %v2440_v16 = vunpack.i.h.bf16 %v2438_v52  ;;  %v2439_v56 = vunpack.i.l.bf16 %v2438_v52  ;;  %v2501_v57 = vpack.i.bf16 %v1283_v54, %v1263_v53  ;;  %v1216_v62 = vrot.slane %v1177_v48, 7 }
 0x20a   : > { %v2496_v63 = vpack.i.bf16 %v1177_v48, %v3454_v47  ;;  %v1264_v3 = vrot.slane %v3454_v47, 1  ;;  %2487 = vrot.lane.b32.xlu0 %v2486_v55, %s2791_s15  ;;  %v1215_v0 = vrot.slane %v3454_v47, 7  ;;  %v1265_v2 = vrot.slane %v1177_v48, 1 }
 0x20b   : > { %v3469_v5 = vsel %vm1163_vm3, %v1161_v43, %v2439_v56  ;;  %v1179_v8 = vsel %vm1163_vm3, %v1162_v59, %v2440_v16  ;;  %v3484_v19 = vsel %vm1196_vm6, %v1209_v22, %v1210_v23  ;;  %v3490_v34 = vsel %vm1196_vm6, %v1212_v45, %v1213_v60 }
 0x20c   : > { %2502 = vrot.lane.b32.xlu1 %v2501_v57, %s2791_s15  ;;  %v1218_v37 = vrot.slane %v3469_v5, 7  ;;  %v1267_v17 = vrot.slane %v3469_v5, 1  ;;  %v2506_v9 = vpack.i.bf16 %v1179_v8, %v3469_v5  ;;  %v1219_v10 = vrot.slane %v1179_v8, 7 }
 0x20d   : > { %v1266_v13 = vsel %vm1245_vm5, %v1264_v3, %v1265_v2  ;;  %v1284_v15 = vsel %vm1245_vm5, %v1265_v2, 0.0  ;;  %v1268_v18 = vrot.slane %v1179_v8, 1  ;;  %v3498_v27 = vsel %vm1196_vm6, %v1215_v0, %v1216_v62 }
 0x20e   : > { %2497 = vrot.lane.b32.xlu0 %v2496_v63, %s2790_s2  ;;  %v2511_v20 = vpack.i.bf16 %v1284_v15, %v1266_v13  ;;  %v3504_v26 = vsel %vm1196_vm6, %v1218_v37, %v1219_v10  ;;  %v1674_v12 = vsel %vm1477_vm4, %v1648_v38, 0  ;;  %v1237_v35 = vsel %vm1196_vm6, 0.0, %v1197_v51 }
 0x20f   : > { %v1269_v21 = vsel %vm1245_vm5, %v1267_v17, %v1268_v18  ;;  %v1285_v25 = vsel %vm1245_vm5, %v1268_v18, 0.0  ;;  %2197 = vmatpush3.bf16.msra.mxu0 %v1674_v12  ;;  %v1238_v52 = vsel %vm1196_vm6, 0.0, %v1200_v11  ;;  %v1239_v6 = vsel %vm1196_vm6, 0.0, %v1203_v61 }
 0x210   : > { %2507 = vrot.lane.b32.xlu1 %v2506_v9, %s2790_s2  ;;  %v2516_v23 = vpack.i.bf16 %v1285_v25, %v1269_v21  ;;  %v1240_v29 = vsel %vm1196_vm6, 0.0, %v1206_v1 }
 0x212   : > { %2512 = vrot.lane.b32.xlu0 %v2511_v20, %s2791_s15 }
 0x214   : > { %2517 = vrot.lane.b32.xlu1 %v2516_v23, %s2791_s15  ;;  %s3652_s15 = scalar_lea.vmem [#allocation9], %s2050_s20  ;;  %s3911_s20 = sld [smem:[#allocation18_spill]] }
 0x215   : > { %s1884_s18 = sshll.u32 %s3652_s15, 4  ;;  %s3724_s18 = int_to_ptr.vmem [resolvable:$true] %s1884_s18 }
 0x216   : > { %s2627_s1 = scalar_lea.vmem %s3724_s18, 2048 }
 0x217   : > { %p2628_p12 = scmp.ne.s32.totalorder %s3724_s18, %s2627_s1 }
 0x219   : > { %p2629_p9 = pnand %p2628_p12, %p3913_p7 }
 0x21a   : > { %s2099_s29 = sshll.u32 %s3911_s20, 5 }
 0x21b   : > { %s1881_s14 = sadd.s32 %s2110_s10, %s2099_s29  ;;  %p2630_p3 = pneg %p2629_p9 }
 0x21c   : > { %s2100_s13 = sshll.u32 %s1881_s14, 7 }
 0x21d   : > { %s3731_s5 = scalar_lea.hbm %s3912_s3, %s2100_s13 }
 0x261   : > { %v2443_v30 = vpop.permute.xlu0 %2442 }
 0x262   : > { %v2445_v31 = vunpack.i.h.bf16 %v2443_v30  ;;  %v2444_v32 = vunpack.i.l.bf16 %v2443_v30 }
 0x264   : > { %v1392_v60 = vsel %vm1390_vm7, %v3353_v58, %v2445_v31  ;;  %v1391_v41 = vsel %vm1390_vm7, %v1237_v35, %v2444_v32  ;;  %v1242_v35 = vsel %vm1196_vm6, 0.0, %v1212_v45 }
 0x266   : > { %v2448_v33 = vpop.permute.xlu0 %2447 }
 0x267   : > { %v2450_v39 = vunpack.i.h.bf16 %v2448_v33  ;;  %v2449_v40 = vunpack.i.l.bf16 %v2448_v33 }
 0x268   : > { %v2453_v36 = vpop.permute.xlu1 %2452 }
 0x269   : > { %v1408_v42 = vsel %vm1407_vm8, %v1391_v41, %v2449_v40  ;;  %v1409_v43 = vsel %vm1407_vm8, %v1392_v60, %v2450_v39  ;;  %v2455_v49 = vunpack.i.h.bf16 %v2453_v36  ;;  %v2454_v50 = vunpack.i.l.bf16 %v2453_v36 }
 0x26a   : > { %v1424_v48 = vpack.c.bf16 %v1409_v43, %v1408_v42 }
 0x26b   : > { %v1394_v54 = vsel %vm1390_vm7, %v3378_v24, %v2455_v49  ;;  %v1393_v55 = vsel %vm1390_vm7, %v1238_v52, %v2454_v50 }
 0x26c   : > { %2180 = vmatprep.mubr.msk.bf16.mxu1 %vm1452_vm9, %v1424_v48  ;;  %v2458_v44 = vpop.permute.xlu0 %2457 }
 0x26d   : > { %v2460_v57 = vunpack.i.h.bf16 %v2458_v44  ;;  %v2459_v59 = vunpack.i.l.bf16 %v2458_v44 }
 0x26e   : > { %v2463_v51 = vpop.permute.xlu1 %2462 }
 0x26f   : > { %v2465_v58 = vunpack.i.h.bf16 %v2463_v51  ;;  %v2464_v53 = vunpack.i.l.bf16 %v2463_v51  ;;  %v1396_v24 = vsel %vm1390_vm7, %v3410_v7, %v2460_v57  ;;  %v1395_v9 = vsel %vm1390_vm7, %v1239_v6, %v2459_v59 }
 0x270   : > { %v1244_v57 = vsel %vm1196_vm6, 0.0, %v1218_v37 }
 0x271   : > { %v1410_v16 = vsel %vm1407_vm8, %v1393_v55, %v2464_v53  ;;  %v1411_v56 = vsel %vm1407_vm8, %v1394_v54, %v2465_v58  ;;  %v1243_v55 = vsel %vm1196_vm6, 0.0, %v1215_v0 }
 0x272   : > { %v1425_v62 = vpack.c.bf16 %v1411_v56, %v1410_v16  ;;  %v2473_v63 = vpop.permute.xlu1 %2472 }
 0x273   : > { %v2468_v11 = vpop.permute.xlu0 %2467  ;;  %v2475_v3 = vunpack.i.h.bf16 %v2473_v63  ;;  %v2474_v2 = vunpack.i.l.bf16 %v2473_v63 }
 0x274   : > { %v2470_v8 = vunpack.i.h.bf16 %v2468_v11  ;;  %v2469_v17 = vunpack.i.l.bf16 %v2468_v11  ;;  %2181 = vmatmul.mubr.msk.bf16.vlgmr.msra.gmra.mxu1 %vm1452_vm9, %v1425_v62 }
 0x275   : > { %v1398_v21 = vsel %vm1390_vm7, %v3448_v14, %v2475_v3  ;;  %v1397_v7 = vsel %vm1390_vm7, %v1240_v29, %v2474_v2  ;;  %v1241_v14 = vsel %vm1196_vm6, 0.0, %v1209_v22 }
 0x276   : > { %v1412_v10 = vsel %vm1407_vm8, %v1395_v9, %v2469_v17  ;;  %v1413_v38 = vsel %vm1407_vm8, %v1396_v24, %v2470_v8  ;;  %v2483_v13 = vpop.permute.xlu1 %2482  ;;  %v3584_v24 = vld [vmem:[%s3907_s25] ss:$0 sm:$0xff] }
 0x277   : > { %v1426_v61 = vpack.c.bf16 %v1413_v38, %v1412_v10  ;;  %v2485_v15 = vunpack.i.h.bf16 %v2483_v13  ;;  %v2484_v18 = vunpack.i.l.bf16 %v2483_v13  ;;  %v2478_v20 = vpop.permute.xlu0 %2477  ;;  %v3591_v13 = vld [vmem:[%s3908_s8] ss:$0 sm:$0xff]  ;;  %s1868_s8 = scalar_lea.sflag [#allocation5], %s3122_s0 }
 0x278   : > { %v2480_v46 = vunpack.i.h.bf16 %v2478_v20  ;;  %v2479_v31 = vunpack.i.l.bf16 %v2478_v20 }
 0x279   : > { %v1414_v25 = vsel %vm1407_vm8, %v1397_v7, %v2484_v18  ;;  %v1415_v23 = vsel %vm1407_vm8, %v1398_v21, %v2485_v15  ;;  %2184 = vmatprep.mubr.msk.bf16.mxu1 %vm1452_vm9, %v1426_v61 }
 0x27a   : > { %v1427_v12 = vpack.c.bf16 %v1415_v23, %v1414_v25  ;;  %v2493_v30 = vpop.permute.xlu1 %2492  ;;  %v1400_v41 = vsel %vm1390_vm7, %v3484_v19, %v2480_v46  ;;  %v1399_v36 = vsel %vm1390_vm7, %v1241_v14, %v2479_v31 }
 0x27b   : > { %v2495_v1 = vunpack.i.h.bf16 %v2493_v30  ;;  %v2494_v32 = vunpack.i.l.bf16 %v2493_v30 }
 0x27c   : > { %2185 = vmatmul.mubr.msk.bf16.gmra.mxu1 %vm1452_vm9, %v1427_v12  ;;  %v2488_v33 = vpop.permute.xlu0 %2487 }
 0x27d   : > { %v2490_v39 = vunpack.i.h.bf16 %v2488_v33  ;;  %v2489_v40 = vunpack.i.l.bf16 %v2488_v33  ;;  %v1401_v48 = vsel %vm1390_vm7, %v1242_v35, %v2494_v32  ;;  %v1402_v4 = vsel %vm1390_vm7, %v3490_v34, %v2495_v1 }
 0x27e   : > { %v2503_v60 = vpop.permute.xlu1 %2502 }
 0x27f   : > { %v2505_v42 = vunpack.i.h.bf16 %v2503_v60  ;;  %v2504_v43 = vunpack.i.l.bf16 %v2503_v60  ;;  %v1416_v22 = vsel %vm1407_vm8, %v1399_v36, %v2489_v40  ;;  %v1417_v28 = vsel %vm1407_vm8, %v1400_v41, %v2490_v39 }
 0x280   : > { %v1428_v45 = vpack.c.bf16 %v1417_v28, %v1416_v22  ;;  %v2498_v44 = vpop.permute.xlu0 %2497 }
 0x281   : > { %v1418_v49 = vsel %vm1407_vm8, %v1401_v48, %v2504_v43  ;;  %v1419_v50 = vsel %vm1407_vm8, %v1402_v4, %v2505_v42  ;;  %v2500_v52 = vunpack.i.h.bf16 %v2498_v44  ;;  %v2499_v58 = vunpack.i.l.bf16 %v2498_v44 }
 0x282   : > { %v1429_v19 = vpack.c.bf16 %v1419_v50, %v1418_v49  ;;  %v2508_v51 = vpop.permute.xlu1 %2507  ;;  %2188 = vmatprep.mubr.msk.bf16.mxu1 %vm1452_vm9, %v1428_v45 }
 0x283   : > { %v2510_v53 = vunpack.i.h.bf16 %v2508_v51  ;;  %v2509_v54 = vunpack.i.l.bf16 %v2508_v51  ;;  %v1403_v62 = vsel %vm1390_vm7, %v1243_v55, %v2499_v58  ;;  %v1404_v63 = vsel %vm1390_vm7, %v3498_v27, %v2500_v52 }
 0x284   : > { %2189 = vmatmul.mubr.msk.bf16.gmra.mxu1 %vm1452_vm9, %v1429_v19  ;;  %v2513_v34 = vpop.permute.xlu0 %2512 }
 0x285   : > { %v2515_v16 = vunpack.i.h.bf16 %v2513_v34  ;;  %v2514_v56 = vunpack.i.l.bf16 %v2513_v34  ;;  %v1405_v0 = vsel %vm1390_vm7, %v1244_v57, %v2509_v54  ;;  %v1406_v2 = vsel %vm1390_vm7, %v3504_v26, %v2510_v53 }
 0x286   : > { %v2518_v59 = vpop.permute.xlu1 %2517 }
 0x287   : > { %v2520_v6 = vunpack.i.h.bf16 %v2518_v59  ;;  %v2519_v11 = vunpack.i.l.bf16 %v2518_v59  ;;  %v1420_v3 = vsel %vm1407_vm8, %v1403_v62, %v2514_v56  ;;  %v1421_v47 = vsel %vm1407_vm8, %v1404_v63, %v2515_v16 }
 0x288   : > { %v1430_v5 = vpack.c.bf16 %v1421_v47, %v1420_v3 }
 0x289   : > { %v1422_v37 = vsel %vm1407_vm8, %v1405_v0, %v2519_v11  ;;  %v1423_v8 = vsel %vm1407_vm8, %v1406_v2, %v2520_v6 }
 0x28a   : > { %v1431_v17 = vpack.c.bf16 %v1423_v8, %v1422_v37  ;;  %2192 = vmatprep.mubr.msk.bf16.mxu1 %vm1452_vm9, %v1430_v5 }
 0x28c   : > { %2193 = vmatmul.mubr.msk.bf16.gmra.mxu1 %vm1452_vm9, %v1431_v17 }
 0x334   : > { %v2182_v27 = vpop.f32.mrf.mxu1 }
 0x335   : > { %v1587_v26 = vmul.f32 %v2182_v27, %v3584_v24 }
 0x336   : > { %v1515_v9 = vpop.f32.mrf.mxu1 }
 0x337   : > { %v1585_v10 = vmul.f32 %v3584_v24, %v1515_v9  ;;  %v1610_v21 = vadd.f32 %v3591_v13, %v1587_v26 }
 0x338   : > { %v2183_v38 = vpop.f32.mrf.mxu1 }
 0x339   : > { %v1588_v29 = vmul.f32 %v2183_v38, %v3584_v24  ;;  %v1608_v15 = vadd.f32 %v3591_v13, %v1585_v10  ;;  %v1626_v1 = vmax.f32 %v1610_v21, 0.0 }
 0x33a   : > { %v1518_v61 = vpop.f32.mrf.mxu1 }
 0x33b   : > { %v1611_v18 = vadd.f32 %v3591_v13, %v1588_v29  ;;  %v1586_v20 = vmul.f32 %v3584_v24, %v1518_v61  ;;  %v1624_v30 = vmax.f32 %v1608_v15, 0.0 }
 0x33c   : > { %v2186_v7 = vpop.f32.mrf.mxu1 }
 0x33d   : > { %v1609_v25 = vadd.f32 %v3591_v13, %v1586_v20  ;;  %v1627_v23 = vmax.f32 %v1611_v18, 0.0  ;;  %v1591_v32 = vmul.f32 %v2186_v7, %v3584_v24 }
 0x33e   : > { %v1531_v12 = vpop.f32.mrf.mxu1 }
 0x33f   : > { %v1625_v46 = vmax.f32 %v1609_v25, 0.0  ;;  %v1589_v31 = vmul.f32 %v3584_v24, %v1531_v12  ;;  %v1641_v39 = vpack.c.bf16 %v1627_v23, %v1626_v1  ;;  %v1614_v42 = vadd.f32 %v3591_v13, %v1591_v32 }
 0x340   : > { %v2187_v33 = vpop.f32.mrf.mxu1 }
 0x341   : > { %v1640_v14 = vpack.c.bf16 %v1625_v46, %v1624_v30  ;;  %v1592_v35 = vmul.f32 %v2187_v33, %v3584_v24  ;;  %v1612_v60 = vadd.f32 %v3591_v13, %v1589_v31  ;;  %v1630_v50 = vmax.f32 %v1614_v42, 0.0  ;;  %v2527_v46 = vld [vmem:[%s3128_s24 + $0x10] sm:$0xff]  ;;  %v2529_v42 = vld [vmem:[%s3128_s24 + $0x18] sm:$0xff] }
 0x342   : > { %v1534_v40 = vpop.f32.mrf.mxu1 }
 0x343   : > { %v1615_v41 = vadd.f32 %v3591_v13, %v1592_v35  ;;  %v1590_v36 = vmul.f32 %v3584_v24, %v1534_v40  ;;  %2198 = vmatprep.mubr.msk.bf16.mxu0 %vm788_vm2, %v1640_v14  ;;  %v1628_v28 = vmax.f32 %v1612_v60, 0.0  ;;  %v2528_v35 = vld [vmem:[%s3128_s24] sm:$0xff] }
 0x344   : > { %v2190_v43 = vpop.f32.mrf.mxu1  ;;  %2199 = vmatmul.mubr.msk.bf16.vlgmr.msra.gmra.mxu0 %vm788_vm2, %v1641_v39 }
 0x345   : > { %v1613_v48 = vadd.f32 %v3591_v13, %v1590_v36  ;;  %v1631_v4 = vmax.f32 %v1615_v41, 0.0  ;;  %v1595_v44 = vmul.f32 %v2190_v43, %v3584_v24 }
 0x346   : > { %v1547_v22 = vpop.f32.mrf.mxu1 }
 0x347   : > { %v1629_v45 = vmax.f32 %v1613_v48, 0.0  ;;  %v1593_v49 = vmul.f32 %v3584_v24, %v1547_v22  ;;  %v1643_v58 = vpack.c.bf16 %v1631_v4, %v1630_v50  ;;  %v1618_v16 = vadd.f32 %v3591_v13, %v1595_v44 }
 0x348   : > { %v2191_v19 = vpop.f32.mrf.mxu1 }
 0x349   : > { %v1642_v51 = vpack.c.bf16 %v1629_v45, %v1628_v28  ;;  %v1596_v52 = vmul.f32 %v2191_v19, %v3584_v24  ;;  %v1616_v54 = vadd.f32 %v3591_v13, %v1593_v49  ;;  %v1634_v3 = vmax.f32 %v1618_v16, 0.0  ;;  %v2530_v45 = vld [vmem:[%s3128_s24 + $0x8] sm:$0xff]  ;;  %v2532_v16 = vld [vmem:[%s3128_s24 + $0x20] sm:$0xff] }
 0x34a   : > { %v1550_v53 = vpop.f32.mrf.mxu1 }
 0x34b   : > { %v1619_v34 = vadd.f32 %v3591_v13, %v1596_v52  ;;  %v1594_v55 = vmul.f32 %v3584_v24, %v1550_v53  ;;  %2202 = vmatprep.mubr.msk.bf16.mxu0 %vm788_vm2, %v1642_v51  ;;  %v1632_v63 = vmax.f32 %v1616_v54, 0.0  ;;  %v2531_v52 = vld [vmem:[%s3128_s24 + $0x30] sm:$0xff] }
 0x34c   : > { %v2194_v56 = vpop.f32.mrf.mxu1  ;;  %2203 = vmatmul.mubr.msk.bf16.gmra.mxu0 %vm788_vm2, %v1643_v58 }
 0x34d   : > { %v1617_v57 = vadd.f32 %v3591_v13, %v1594_v55  ;;  %v1635_v59 = vmax.f32 %v1619_v34, 0.0  ;;  %v1599_v47 = vmul.f32 %v2194_v56, %v3584_v24 }
 0x34e   : > { %v1563_v62 = vpop.f32.mrf.mxu1 }
 0x34f   : > { %v1633_v6 = vmax.f32 %v1617_v57, 0.0  ;;  %v1597_v11 = vmul.f32 %v3584_v24, %v1563_v62  ;;  %v1645_v37 = vpack.c.bf16 %v1635_v59, %v1634_v3  ;;  %v1622_v10 = vadd.f32 %v3591_v13, %v1599_v47 }
 0x350   : > { %v2195_v0 = vpop.f32.mrf.mxu1 }
 0x351   : > { %v1644_v2 = vpack.c.bf16 %v1633_v6, %v1632_v63  ;;  %v1600_v5 = vmul.f32 %v2195_v0, %v3584_v24  ;;  %v1620_v17 = vadd.f32 %v3591_v13, %v1597_v11  ;;  %v1638_v15 = vmax.f32 %v1622_v10, 0.0  ;;  %v2533_v6 = vld [vmem:[%s3128_s24 + $0x38] sm:$0xff]  ;;  %v2535_v10 = vld [vmem:[%s3128_s24 + $0x50] sm:$0xff] }
 0x352   : > { %v1566_v8 = vpop.f32.mrf.mxu1 }
 0x353   : > { %v1623_v27 = vadd.f32 %v3591_v13, %v1600_v5  ;;  %v1598_v9 = vmul.f32 %v3584_v24, %v1566_v8  ;;  %2206 = vmatprep.mubr.msk.bf16.mxu0 %vm788_vm2, %v1644_v2  ;;  %v1636_v29 = vmax.f32 %v1620_v17, 0.0  ;;  %v3634_v24 = vld [vmem:[%s3909_s26] ss:$0 sm:$0xff]  ;;  %v2534_v5 = vld [vmem:[%s3128_s24 + $0x28] sm:$0xff] }
 0x354   : > { %2207 = vmatmul.mubr.msk.bf16.gmra.mxu0 %vm788_vm2, %v1645_v37 }
 0x355   : > { %v1621_v26 = vadd.f32 %v3591_v13, %v1598_v9  ;;  %v1639_v38 = vmax.f32 %v1623_v27, 0.0  ;;  %v3639_v13 = vld [vmem:[%s3910_s12] ss:$0 sm:$0xff] }
 0x357   : > { %v1637_v61 = vmax.f32 %v1621_v26, 0.0  ;;  %v1647_v20 = vpack.c.bf16 %v1639_v38, %v1638_v15 }
 0x359   : > { %v1646_v18 = vpack.c.bf16 %v1637_v61, %v1636_v29 }
 0x35b   : > { %2210 = vmatprep.mubr.msk.bf16.mxu0 %vm788_vm2, %v1646_v18  ;;  %v2536_v18 = vld [vmem:[%s3128_s24 + $0x40] sm:$0xff] }
 0x35c   : > { %2211 = vmatmul.mubr.msk.bf16.gmra.mxu0 %vm788_vm2, %v1647_v20 }
 0x404   : > { %v2200_v21 = vpop.f32.mrf.mxu0 }
 0x405   : > { %v1782_v7 = vmul.f32 %v2200_v21, %v3634_v24 }
 0x406   : > { %v1710_v25 = vpop.f32.mrf.mxu0 }
 0x407   : > { %v1805_v23 = vadd.f32 %v3639_v13, %v1782_v7  ;;  %v1780_v12 = vmul.f32 %v3634_v24, %v1710_v25 }
 0x408   : > { %v2201_v30 = vpop.f32.mrf.mxu0 }
 0x409   : > { %v1821_v31 = vadd.f32 %v2527_v46, %v1805_v23  ;;  %v1803_v1 = vadd.f32 %v3639_v13, %v1780_v12  ;;  %v1783_v32 = vmul.f32 %v2201_v30, %v3634_v24  ;;  %v2537_v12 = vld [vmem:[%s3128_s24 + $0x58] sm:$0xff] }
 0x40a   : > { %v1713_v33 = vpop.f32.mrf.mxu0 }
 0x40b   : > { %v1837_v14 = vmax.f32 %v1821_v31, 0.0  ;;  %v1819_v39 = vadd.f32 %v2528_v35, %v1803_v1  ;;  %v1806_v40 = vadd.f32 %v3639_v13, %v1783_v32  ;;  %v1781_v60 = vmul.f32 %v3634_v24, %v1713_v33  ;;  %v2538_v33 = vld [vmem:[%s3128_s24 + $0x48] sm:$0xff] }
 0x40c   : > { %v2204_v41 = vpop.f32.mrf.mxu0 }
 0x40d   : > { %1853 = vst.msk [vmem:[%s3652_s15 + $0x10] sm:$0xff] %vm603_vm1, %v1837_v14  ;;  %v1835_v36 = vmax.f32 %v1819_v39, 0.0  ;;  %v1822_v43 = vadd.f32 %v2529_v42, %v1806_v40  ;;  %v1804_v48 = vadd.f32 %v3639_v13, %v1781_v60  ;;  %v1786_v4 = vmul.f32 %v2204_v41, %v3634_v24  ;;  %v2539_v41 = vld [vmem:[%s3128_s24 + $0x70] sm:$0xff] }
 0x40e   : > { %v1726_v22 = vpop.f32.mrf.mxu0 }
 0x40f   : > { %1851 = vst.msk [vmem:[%s3652_s15] sm:$0xff] %vm603_vm1, %v1835_v36  ;;  %v1838_v28 = vmax.f32 %v1822_v43, 0.0  ;;  %v1820_v49 = vadd.f32 %v2530_v45, %v1804_v48  ;;  %v1809_v50 = vadd.f32 %v3639_v13, %v1786_v4  ;;  %v1784_v44 = vmul.f32 %v3634_v24, %v1726_v22  ;;  %v2540_v22 = vld [vmem:[%s3128_s24 + $0x60] sm:$0xff] }
 0x410   : > { %v2205_v19 = vpop.f32.mrf.mxu0 }
 0x411   : > { %1854 = vst.msk [vmem:[%s3652_s15 + $0x18] sm:$0xff] %vm603_vm1, %v1838_v28  ;;  %v1836_v51 = vmax.f32 %v1820_v49, 0.0  ;;  %v1825_v58 = vadd.f32 %v2531_v52, %v1809_v50  ;;  %v1807_v53 = vadd.f32 %v3639_v13, %v1784_v44  ;;  %v1787_v54 = vmul.f32 %v2205_v19, %v3634_v24  ;;  %v2541_v44 = vld [vmem:[%s3128_s24 + $0x78] sm:$0xff] }
 0x412   : > { %v1729_v34 = vpop.f32.mrf.mxu0 }
 0x413   : > { %1852 = vst.msk [vmem:[%s3652_s15 + $0x8] sm:$0xff] %vm603_vm1, %v1836_v51  ;;  %v1841_v55 = vmax.f32 %v1825_v58, 0.0  ;;  %v1823_v56 = vadd.f32 %v2532_v16, %v1807_v53  ;;  %v1810_v57 = vadd.f32 %v3639_v13, %v1787_v54  ;;  %v1785_v59 = vmul.f32 %v3634_v24, %v1729_v34  ;;  %v2542_v58 = vld [vmem:[%s3128_s24 + $0x68] sm:$0xff]  ;;  %s2792_s24 = smov [#allocation9]  }
 0x414   : > { %v2208_v62 = vpop.f32.mrf.mxu0  ;;  %s2631_s4 = sshll.u32 %s2792_s24, 4  ;;  %s2632_s4 = int_to_ptr.vmem [resolvable:$false] %s2631_s4 }
 0x415   : > { %1857 = vst.msk [vmem:[%s3652_s15 + $0x30] sm:$0xff] %vm603_vm1, %v1841_v55  ;;  %v1839_v63 = vmax.f32 %v1823_v56, 0.0  ;;  %v1826_v11 = vadd.f32 %v2533_v6, %v1810_v57  ;;  %v1808_v3 = vadd.f32 %v3639_v13, %v1785_v59  ;;  %v1790_v47 = vmul.f32 %v2208_v62, %v3634_v24  ;;  %s2633_s26 = scalar_lea.vmem %s2632_s4, 4096  ;;  %p2634_p1 = scmp.lt.s32.totalorder %s3724_s18, %s2632_s4 }
 0x416   : > { %v1742_v0 = vpop.f32.mrf.mxu0  ;;  %p2635_p8 = scmp.lt.s32.totalorder %s2633_s26, %s2627_s1 }
 0x417   : > { %1855 = vst.msk [vmem:[%s3652_s15 + $0x20] sm:$0xff] %vm603_vm1, %v1839_v63  ;;  %v1842_v2 = vmax.f32 %v1826_v11, 0.0  ;;  %v1824_v37 = vadd.f32 %v2534_v5, %v1808_v3  ;;  %v1813_v8 = vadd.f32 %v3639_v13, %v1790_v47  ;;  %v1788_v17 = vmul.f32 %v3634_v24, %v1742_v0 }
 0x418   : > { %v2209_v27 = vpop.f32.mrf.mxu0  ;;  %p2636_p5 = por %p2635_p8, %p2634_p1 }
 0x419   : > { %1858 = vst.msk [vmem:[%s3652_s15 + $0x38] sm:$0xff] %vm603_vm1, %v1842_v2  ;;  %v1840_v9 = vmax.f32 %v1824_v37, 0.0  ;;  %v1829_v26 = vadd.f32 %v2535_v10, %v1813_v8  ;;  %v1811_v38 = vadd.f32 %v3639_v13, %v1788_v17  ;;  %v1791_v29 = vmul.f32 %v2209_v27, %v3634_v24 }
 0x41a   : > { %v1745_v61 = vpop.f32.mrf.mxu0  ;;  %p2637_p6 = pnand %p2636_p5, %p2630_p3 }
 0x41b   : > { %1856 = vst.msk [vmem:[%s3652_s15 + $0x28] sm:$0xff] %vm603_vm1, %v1840_v9  ;;  %v1845_v15 = vmax.f32 %v1829_v26, 0.0  ;;  %v1827_v20 = vadd.f32 %v2536_v18, %v1811_v38  ;;  %v1814_v21 = vadd.f32 %v3639_v13, %v1791_v29  ;;  %v1789_v7 = vmul.f32 %v3634_v24, %v1745_v61 }
 0x41c   : > { %v2212_v25 = vpop.f32.mrf.mxu0 }
 0x41d   : > { %1861 = vst.msk [vmem:[%s3652_s15 + $0x50] sm:$0xff] %vm603_vm1, %v1845_v15  ;;  %v1843_v23 = vmax.f32 %v1827_v20, 0.0  ;;  %v1830_v30 = vadd.f32 %v2537_v12, %v1814_v21  ;;  %v1812_v46 = vadd.f32 %v3639_v13, %v1789_v7  ;;  %v1794_v31 = vmul.f32 %v2212_v25, %v3634_v24 }
 0x41e   : > { %v1758_v1 = vpop.f32.mrf.mxu0 }
 0x41f   : > { %1859 = vst.msk [vmem:[%s3652_s15 + $0x40] sm:$0xff] %vm603_vm1, %v1843_v23  ;;  %v1846_v32 = vmax.f32 %v1830_v30, 0.0  ;;  %v1828_v14 = vadd.f32 %v2538_v33, %v1812_v46  ;;  %v1817_v35 = vadd.f32 %v3639_v13, %v1794_v31  ;;  %v1792_v39 = vmul.f32 %v3634_v24, %v1758_v1 }
 0x420   : > { %v2213_v40 = vpop.f32.mrf.mxu0 }
 0x421   : > { %1862 = vst.msk [vmem:[%s3652_s15 + $0x58] sm:$0xff] %vm603_vm1, %v1846_v32  ;;  %v1844_v60 = vmax.f32 %v1828_v14, 0.0  ;;  %v1833_v36 = vadd.f32 %v2539_v41, %v1817_v35  ;;  %v1815_v42 = vadd.f32 %v3639_v13, %v1792_v39  ;;  %v1795_v43 = vmul.f32 %v2213_v40, %v3634_v24 }
 0x422   : > { %v1761_v48 = vpop.f32.mrf.mxu0 }
 0x423   : > { %1860 = vst.msk [vmem:[%s3652_s15 + $0x48] sm:$0xff] %vm603_vm1, %v1844_v60  ;;  %v1849_v4 = vmax.f32 %v1833_v36, 0.0  ;;  %v1831_v28 = vadd.f32 %v2540_v22, %v1815_v42  ;;  %v1818_v45 = vadd.f32 %v3639_v13, %v1795_v43  ;;  %v1793_v49 = vmul.f32 %v3634_v24, %v1761_v48 }
 0x425   : > { %1865 = vst.msk [vmem:[%s3652_s15 + $0x70] sm:$0xff] %vm603_vm1, %v1849_v4  ;;  %v1847_v50 = vmax.f32 %v1831_v28, 0.0  ;;  %v1834_v19 = vadd.f32 %v2541_v44, %v1818_v45  ;;  %v1816_v51 = vadd.f32 %v3639_v13, %v1793_v49 }
 0x427   : > { %1863 = vst.msk [vmem:[%s3652_s15 + $0x60] sm:$0xff] %vm603_vm1, %v1847_v50  ;;  %v1850_v52 = vmax.f32 %v1834_v19, 0.0  ;;  %v1832_v53 = vadd.f32 %v2542_v58, %v1816_v51 }
 0x429   : > { %1866 = vst.msk [vmem:[%s3652_s15 + $0x78] sm:$0xff] %vm603_vm1, %v1850_v52  ;;  %v1848_v24 = vmax.f32 %v1832_v53, 0.0 }
 0x42b   : > { %1864 = vst.msk [vmem:[%s3652_s15 + $0x68] sm:$0xff] %vm603_vm1, %v1848_v24 }
 0x42c   : > { %2640 = shalt.err (!%p2637_p6)
}
 0x42d   : > { %s2641_s2 = scalar_lea.hbm %s3731_s5, 2048  ;;  %s2645_s15 = scalar_lea.hbm %s3912_s3, 8192 }
 0x42e   : > { %p2642_p10 = scmp.ne.s32.totalorder %s3731_s5, %s2641_s2  ;;  %p2646_p2 = scmp.lt.s32.totalorder %s3731_s5, %s3912_s3 }
 0x42f   : > { %p2647_p11 = scmp.lt.s32.totalorder %s2645_s15, %s2641_s2 }
 0x430   : > { %p2643_p13 = pnand %p2642_p10, %p3913_p7 }
 0x431   : > { %p2648_p4 = por %p2647_p11, %p2646_p2 }
 0x432   : > { %p2644_p0 = pneg %p2643_p13 }
 0x434   : > { %p2649_p12 = pnand %p2648_p4, %p2644_p0 }
 0x436   : > { %2652 = shalt.err (!%p2649_p12)
}
 0x437   : > { %s2793_s29 = smov 128  }
 0x438   : > { %2222 = dma.vmem_to_hbm [thread:$0]  (%p3913_p7), %s3724_s18, 2048, %s3731_s5, %s1868_s8, %s2793_s29, %s2793_s29, %s2788_s21  }
 0x439 PF: > { %p2239_p9 = scmp.ge.s32.totalorder %s2779_s16, 2  ;;  %s1899_s14 = sand.u32 1, %s2751_s27  }
 0x43a   : > { %p3914_p3 = scmp.ne.s32.totalorder %s3882_s9, 0  ;;  %s1900_s13 = scalar_lea.sflag [#allocation5], %s1899_s14 }
 0x43c   : > { %p2235_p1 = pnand %p2239_p9, %p3914_p3 }
 0x43e   : > { %p2236_p8 = pneg %p2235_p1 }
 0x440   : > { %2722 = dma.done.wait (%p2236_p8), %s1900_s13, 2048  }
 0x441   : > { %2724 = vsyncadd (%p2236_p8), %s1900_s13, 4294965248  ;;  %s31_s16 = sadd.s32 1, %s2779_s16   ;;  %s3916_s24 = sld [smem:[#allocation14_spill]] }
 0x442   : > { %p3764_p5 = scmp.ge.s32.totalorder %s31_s16, 6   ;;  %s3917_s25 = sld [smem:[#allocation15_spill]] }
 0x443   : > { %s3918_s26 = sld [smem:[#allocation25_spill]]  ;;  %s3925_s21 = smov %s2731_s22 }
 0x444   : > { %s3919_s0 = sld [smem:[#allocation16_spill]]  ;;  %s3926_s22 = smov %s2735_s23 }
 0x445   : > { %s3920_s29 = sld [smem:[#allocation26_spill]]  ;;  %s3927_s23 = smov %s3097_s6 }
 0x446   : > { %s3921_s30 = sld [smem:[#allocation19_spill]]  ;;  %s3928_s27 = smov %s2755_s28 }
 0x447   : > { %s3922_s13 = sld [smem:[#allocation20_spill]]  ;;  %30 = sbr.rel (!%p3764_p5) target bundleno = 26 (0x1a), region = 140 }
 0x448   : > { %s3923_s14 = sld [smem:[#allocation21_spill]] }
 0x449   : > { %s3924_s15 = sld [smem:[#allocation22_spill]] }
 0x44a   : > { %s3929_s28 = smov %s3919_s0 }
 0x44c   :  { %1905 = vsyncpa [#allocation4], 1 }
 0x44d   :  { %1907 = vsyncpa [#allocation4 + $0x1], 1 }
 0x44e   :  { %1908 = vsyncpa [#allocation7], 1 }
 0x44f   :  { %1910 = vsyncpa [#allocation7 + $0x1], 1 }
 0x450   :  { %1911 = vsyncpa [#allocation5], 1 }
 0x451   :  { %1913 = vsyncpa [#allocation5 + $0x1], 1 }

</bundles_post_ra>
